<compile_context>
chip_gen: v5e
topology: v5e:2x2
jax: 0.10.0
libtpu: 0.0.40
codegen_flags: <defaults>
</compile_context>

<pallas_src>
import functools

import jax
import jax.numpy as jnp
from jax.experimental import pallas as pl
from jax.experimental.pallas import tpu as pltpu

NUM_LAYERS = 4
NUM_SPINS = 32           # num_spins
NUM_NEURONS = NUM_SPINS  # num_neurons = num_spins (as in the reference script)
BATCH = 256
TILE_B = 128             # batch tile per grid step -> grid of 2 parallel steps


def dsnn_kernel(num_layers, num_neurons,
                s0_ref, weff_ref, beff_ref, wqcat_ref, bqcat_ref,
                wo1_ref, head_ref, out_ref):
    """Packed-parameter DSNN forward for one batch tile.

    weff_ref : (2L, N, N)  -- [W1_0, W2_0, W1_1, W2_1, ...]
    beff_ref : (2L, N)     -- matching biases
    wqcat_ref: (N, L*N)    -- all quasi-particle weights concatenated on lanes
    bqcat_ref: (1, L*N)
    wo1_ref  : (N, N)      -- output-head first linear
    head_ref : (3, N)      -- row 0: bo1, row 1: Wo2^T, row 2: [bo2, 0, ...]
    """
    n = num_neurons
    s0 = s0_ref[...].astype(jnp.float32)

    # Fused quasi-particle branch: one (TILE_B,32) x (32,128) matmul + one tanh
    # pass over full-lane vregs instead of 4 tiny serial matmuls + tanh calls.
    qp_all = jnp.tanh(
        jnp.dot(s0, wqcat_ref[...], preferred_element_type=jnp.float32)
        + bqcat_ref[...]
    )

    s = s0
    for i in range(num_layers):
        w1 = weff_ref[2 * i]                       # (N, N)
        w2 = weff_ref[2 * i + 1]                   # (N, N)
        b1 = beff_ref[2 * i: 2 * i + 1, :]         # (1, N)
        b2 = beff_ref[2 * i + 1: 2 * i + 2, :]     # (1, N)
        # effective field:  Fi = Linear(Tanh(Linear(S)))
        h = jnp.tanh(jnp.dot(s, w1, preferred_element_type=jnp.float32) + b1)
        fi = jnp.dot(h, w2, preferred_element_type=jnp.float32) + b2
        # quasi particle slice for this layer (static lane slice)
        qp = qp_all[:, i * n:(i + 1) * n]
        s = qp * fi

    # output head: Linear(N, N) -> Tanh -> Linear(N, 1)
    bo1 = head_ref[0:1, :]                         # (1, N)
    wo2_row = head_ref[1:2, :]                     # (1, N)  (Wo2 transposed)
    bo2 = head_ref[2:3, 0:1]                       # (1, 1)
    h = jnp.tanh(
        jnp.dot(s, wo1_ref[...], preferred_element_type=jnp.float32) + bo1
    )
    # N=1 matmul done on VPU/XLU: elementwise multiply + lane reduction.
    e = jnp.sum(h * wo2_row, axis=-1, keepdims=True) + bo2
    # .sum(dim=1, keepdim=True) on a (B, 1) tensor is the identity.
    out_ref[...] = e.astype(out_ref.dtype)


def pack_params(params, num_layers):
    """Pack the flat per-layer parameter list into 6 kernel inputs."""
    weff, beff, wq_list, bq_list = [], [], [], []
    idx = 0
    for _ in range(num_layers):
        w1, b1, w2, b2, wq, bq = params[idx:idx + 6]
        idx += 6
        weff += [w1, w2]
        beff += [b1.reshape(-1), b2.reshape(-1)]
        wq_list.append(wq)
        bq_list.append(bq.reshape(-1))
    wo1, bo1, wo2, bo2 = params[idx:idx + 4]
    n = wo1.shape[0]

    weff = jnp.stack(weff, axis=0)                        # (2L, N, N)
    beff = jnp.stack(beff, axis=0)                        # (2L, N)
    wq_cat = jnp.concatenate(wq_list, axis=1)             # (num_spins, L*N)
    bq_cat = jnp.concatenate(bq_list, axis=0)[None, :]    # (1, L*N)
    bo2_row = jnp.zeros((n,), jnp.float32).at[0].set(bo2.reshape(-1)[0])
    head = jnp.stack(
        [bo1.reshape(-1), wo2.reshape(-1), bo2_row], axis=0
    )                                                     # (3, N)
    return weff, beff, wq_cat, bq_cat, wo1, head


def dsnn_forward(s0, params, *, num_layers=NUM_LAYERS, tile_b=TILE_B):
    """params: flat list [W1_i, b1_i, W2_i, b2_i, Wq_i, bq_i]*L + [Wo1, bo1, Wo2, bo2]."""
    b, n = s0.shape
    assert b % tile_b == 0

    weff, beff, wq_cat, bq_cat, wo1, head = pack_params(params, num_layers)
    num_neurons = weff.shape[-1]
    packed = (weff, beff, wq_cat, bq_cat, wo1, head)

    # Full-array (untiled) BlockSpecs with constant index maps: the weight
    # blocks are fetched once and stay resident across the parallel grid steps.
    def const_spec(p):
        nd = p.ndim
        return pl.BlockSpec(p.shape, lambda i, _nd=nd: (0,) * _nd)

    in_specs = [pl.BlockSpec((tile_b, n), lambda i: (i, 0))] + [
        const_spec(p) for p in packed
    ]
    out_spec = pl.BlockSpec((tile_b, 1), lambda i: (i, 0))

    return pl.pallas_call(
        functools.partial(dsnn_kernel, num_layers, num_neurons),
        out_shape=jax.ShapeDtypeStruct((b, 1), jnp.float32),
        grid_spec=pltpu.PrefetchScalarGridSpec(
            num_scalar_prefetch=0,
            grid=(b // tile_b,),
            in_specs=in_specs,
            out_specs=out_spec,
        ),
        compiler_params=pltpu.CompilerParams(
            dimension_semantics=("parallel",)
        ),
    )(s0, *packed)


def init_params(key, num_spins, num_neurons, num_layers):
    """Deterministic synthetic parameters. Weights stored as (in, out)."""
    params = []
    keys = jax.random.split(key, num_layers * 6 + 4)
    k = 0

    def lin(kw, fan_in, fan_out):
        bound = 1.0 / jnp.sqrt(fan_in)
        return jax.random.uniform(kw, (fan_in, fan_out), jnp.float32, -bound, bound)

    for i in range(1, num_layers + 1):
        in_dim = num_spins if i == 1 else num_neurons
        # effective field layer: Linear(in, N) -> Tanh -> Linear(N, N)
        params.append(lin(keys[k], in_dim, num_neurons)); k += 1
        params.append(jax.random.uniform(keys[k], (1, num_neurons), jnp.float32,
                                         -1.0 / jnp.sqrt(in_dim), 1.0 / jnp.sqrt(in_dim))); k += 1
        params.append(lin(keys[k], num_neurons, num_neurons)); k += 1
        params.append(jax.random.uniform(keys[k], (1, num_neurons), jnp.float32,
                                         -1.0 / jnp.sqrt(num_neurons), 1.0 / jnp.sqrt(num_neurons))); k += 1
        # quasi particle layer: Linear(num_spins, N)
        params.append(lin(keys[k], num_spins, num_neurons)); k += 1
        params.append(jax.random.uniform(keys[k], (1, num_neurons), jnp.float32,
                                         -1.0 / jnp.sqrt(num_spins), 1.0 / jnp.sqrt(num_spins))); k += 1

    # output head: Linear(N, N) -> Tanh -> Linear(N, 1)
    params.append(lin(keys[k], num_neurons, num_neurons)); k += 1
    params.append(jax.random.uniform(keys[k], (1, num_neurons), jnp.float32,
                                     -1.0 / jnp.sqrt(num_neurons), 1.0 / jnp.sqrt(num_neurons))); k += 1
    params.append(lin(keys[k], num_neurons, 1)); k += 1
    params.append(jax.random.uniform(keys[k], (1, 1), jnp.float32,
                                     -1.0 / jnp.sqrt(num_neurons), 1.0 / jnp.sqrt(num_neurons))); k += 1
    return params


def dsnn_reference(s0, params, num_layers=NUM_LAYERS):
    """Pure-JAX reference matching the PyTorch forward semantics (unpacked params)."""
    s = s0
    idx = 0
    for _ in range(num_layers):
        w1, b1, w2, b2, wq, bq = params[idx:idx + 6]
        idx += 6
        fi = jnp.tanh(s @ w1 + b1) @ w2 + b2
        s = jnp.tanh(s0 @ wq + bq) * fi
    wo1, bo1, wo2, bo2 = params[idx:idx + 4]
    e = jnp.tanh(s @ wo1 + bo1) @ wo2 + bo2
    return jnp.sum(e, axis=1, keepdims=True)


if __name__ == "__main__":
    key = jax.random.PRNGKey(0)
    k_x, k_p = jax.random.split(key)

    # Spin configurations in {-1, +1}, shape (batch, num_spins).
    s0 = jnp.sign(jax.random.normal(k_x, (BATCH, NUM_SPINS), jnp.float32))
    s0 = jnp.where(s0 == 0, 1.0, s0).astype(jnp.float32)

    params = init_params(k_p, NUM_SPINS, NUM_NEURONS, NUM_LAYERS)

    out = dsnn_forward(s0, params)
    out = jax.block_until_ready(out)

    ref = dsnn_reference(s0, params)
    assert out.shape == (BATCH, 1)
    assert jnp.allclose(out, ref, atol=1e-4, rtol=1e-5), (out, ref)

    print("KERNEL_OK")
</pallas_src>

<mosaic_0001>
module attributes {stable_mosaic.version = 11 : i64} {
  func.func @dsnn_kernel(%arg0: i32, %arg1: memref<128x32xf32, #tpu.memory_space<vmem>>, %arg2: memref<8x32x32xf32, #tpu.memory_space<vmem>>, %arg3: memref<8x32xf32, #tpu.memory_space<vmem>>, %arg4: memref<32x128xf32, #tpu.memory_space<vmem>>, %arg5: memref<1x128xf32, #tpu.memory_space<vmem>>, %arg6: memref<32x32xf32, #tpu.memory_space<vmem>>, %arg7: memref<3x32xf32, #tpu.memory_space<vmem>>, %arg8: memref<128x1xf32, #tpu.memory_space<vmem>>) attributes {dimension_semantics = [#tpu.dimension_semantics<parallel>], iteration_bounds = array<i64: 2>, scalar_prefetch = 0 : i64, scratch_operands = 0 : i64, tpu.core_type = #tpu.core_type<tc>, window_params = [{transform_indices = @transform_0, window_bounds = array<i64: 128, 32>}, {pipeline_mode = #tpu.pipeline_mode<synchronous>, transform_indices = @transform_1, window_bounds = array<i64: 8, 32, 32>}, {pipeline_mode = #tpu.pipeline_mode<synchronous>, transform_indices = @transform_2, window_bounds = array<i64: 8, 32>}, {pipeline_mode = #tpu.pipeline_mode<synchronous>, transform_indices = @transform_3, window_bounds = array<i64: 32, 128>}, {pipeline_mode = #tpu.pipeline_mode<synchronous>, transform_indices = @transform_4, window_bounds = array<i64: 1, 128>}, {pipeline_mode = #tpu.pipeline_mode<synchronous>, transform_indices = @transform_5, window_bounds = array<i64: 32, 32>}, {pipeline_mode = #tpu.pipeline_mode<synchronous>, transform_indices = @transform_6, window_bounds = array<i64: 3, 32>}, {transform_indices = @transform_7, window_bounds = array<i64: 128, 1>}]} {
    %c0 = arith.constant 0 : index
    %c0_0 = arith.constant 0 : index
    %0 = vector.load %arg1[%c0, %c0_0] : memref<128x32xf32, #tpu.memory_space<vmem>>, vector<128x32xf32>
    %c0_1 = arith.constant 0 : index
    %c0_2 = arith.constant 0 : index
    %1 = vector.load %arg4[%c0_1, %c0_2] : memref<32x128xf32, #tpu.memory_space<vmem>>, vector<32x128xf32>
    %cst = arith.constant dense<0.000000e+00> : vector<128x128xf32>
    %2 = tpu.matmul %0, %1, %cst {dimension_numbers = #tpu.dot_dimension_numbers<[1], [0], [0], [1], [0, 0, 1, 1], [], []>} : vector<128x32xf32>, vector<32x128xf32>, vector<128x128xf32> -> vector<128x128xf32>
    %c0_3 = arith.constant 0 : index
    %c0_4 = arith.constant 0 : index
    %3 = vector.load %arg5[%c0_3, %c0_4] : memref<1x128xf32, #tpu.memory_space<vmem>>, vector<1x128xf32>
    %4 = vector.broadcast %3 : vector<1x128xf32> to vector<128x128xf32>
    %5 = arith.addf %2, %4 : vector<128x128xf32>
    %6 = math.tanh %5 : vector<128x128xf32>
    %c0_5 = arith.constant 0 : index
    %c0_6 = arith.constant 0 : index
    %c0_7 = arith.constant 0 : index
    %7 = vector.load %arg2[%c0_5, %c0_6, %c0_7] : memref<8x32x32xf32, #tpu.memory_space<vmem>>, vector<1x32x32xf32>
    %8 = vector.shape_cast %7 : vector<1x32x32xf32> to vector<32x32xf32>
    %c1 = arith.constant 1 : index
    %c0_8 = arith.constant 0 : index
    %c0_9 = arith.constant 0 : index
    %9 = vector.load %arg2[%c1, %c0_8, %c0_9] : memref<8x32x32xf32, #tpu.memory_space<vmem>>, vector<1x32x32xf32>
    %10 = vector.shape_cast %9 : vector<1x32x32xf32> to vector<32x32xf32>
    %c0_10 = arith.constant 0 : index
    %c0_11 = arith.constant 0 : index
    %11 = vector.load %arg3[%c0_10, %c0_11] : memref<8x32xf32, #tpu.memory_space<vmem>>, vector<1x32xf32>
    %c1_12 = arith.constant 1 : index
    %c0_13 = arith.constant 0 : index
    %12 = vector.load %arg3[%c1_12, %c0_13] : memref<8x32xf32, #tpu.memory_space<vmem>>, vector<1x32xf32>
    %cst_14 = arith.constant dense<0.000000e+00> : vector<128x32xf32>
    %13 = tpu.matmul %0, %8, %cst_14 {dimension_numbers = #tpu.dot_dimension_numbers<[1], [0], [0], [1], [0, 0, 1, 1], [], []>} : vector<128x32xf32>, vector<32x32xf32>, vector<128x32xf32> -> vector<128x32xf32>
    %14 = vector.broadcast %11 : vector<1x32xf32> to vector<128x32xf32>
    %15 = arith.addf %13, %14 : vector<128x32xf32>
    %16 = math.tanh %15 : vector<128x32xf32>
    %cst_15 = arith.constant dense<0.000000e+00> : vector<128x32xf32>
    %17 = tpu.matmul %16, %10, %cst_15 {dimension_numbers = #tpu.dot_dimension_numbers<[1], [0], [0], [1], [0, 0, 1, 1], [], []>} : vector<128x32xf32>, vector<32x32xf32>, vector<128x32xf32> -> vector<128x32xf32>
    %18 = vector.broadcast %12 : vector<1x32xf32> to vector<128x32xf32>
    %19 = arith.addf %17, %18 : vector<128x32xf32>
    %20 = vector.extract_strided_slice %6 {offsets = [0, 0], sizes = [128, 32], strides = [1, 1]} : vector<128x128xf32> to vector<128x32xf32>
    %21 = arith.mulf %20, %19 : vector<128x32xf32>
    %c2 = arith.constant 2 : index
    %c0_16 = arith.constant 0 : index
    %c0_17 = arith.constant 0 : index
    %22 = vector.load %arg2[%c2, %c0_16, %c0_17] : memref<8x32x32xf32, #tpu.memory_space<vmem>>, vector<1x32x32xf32>
    %23 = vector.shape_cast %22 : vector<1x32x32xf32> to vector<32x32xf32>
    %c3 = arith.constant 3 : index
    %c0_18 = arith.constant 0 : index
    %c0_19 = arith.constant 0 : index
    %24 = vector.load %arg2[%c3, %c0_18, %c0_19] : memref<8x32x32xf32, #tpu.memory_space<vmem>>, vector<1x32x32xf32>
    %25 = vector.shape_cast %24 : vector<1x32x32xf32> to vector<32x32xf32>
    %c2_20 = arith.constant 2 : index
    %c0_21 = arith.constant 0 : index
    %26 = vector.load %arg3[%c2_20, %c0_21] : memref<8x32xf32, #tpu.memory_space<vmem>>, vector<1x32xf32>
    %c3_22 = arith.constant 3 : index
    %c0_23 = arith.constant 0 : index
    %27 = vector.load %arg3[%c3_22, %c0_23] : memref<8x32xf32, #tpu.memory_space<vmem>>, vector<1x32xf32>
    %cst_24 = arith.constant dense<0.000000e+00> : vector<128x32xf32>
    %28 = tpu.matmul %21, %23, %cst_24 {dimension_numbers = #tpu.dot_dimension_numbers<[1], [0], [0], [1], [0, 0, 1, 1], [], []>} : vector<128x32xf32>, vector<32x32xf32>, vector<128x32xf32> -> vector<128x32xf32>
    %29 = vector.broadcast %26 : vector<1x32xf32> to vector<128x32xf32>
    %30 = arith.addf %28, %29 : vector<128x32xf32>
    %31 = math.tanh %30 : vector<128x32xf32>
    %cst_25 = arith.constant dense<0.000000e+00> : vector<128x32xf32>
    %32 = tpu.matmul %31, %25, %cst_25 {dimension_numbers = #tpu.dot_dimension_numbers<[1], [0], [0], [1], [0, 0, 1, 1], [], []>} : vector<128x32xf32>, vector<32x32xf32>, vector<128x32xf32> -> vector<128x32xf32>
    %33 = vector.broadcast %27 : vector<1x32xf32> to vector<128x32xf32>
    %34 = arith.addf %32, %33 : vector<128x32xf32>
    %35 = vector.extract_strided_slice %6 {offsets = [0, 32], sizes = [128, 32], strides = [1, 1]} : vector<128x128xf32> to vector<128x32xf32>
    %36 = arith.mulf %35, %34 : vector<128x32xf32>
    %c4 = arith.constant 4 : index
    %c0_26 = arith.constant 0 : index
    %c0_27 = arith.constant 0 : index
    %37 = vector.load %arg2[%c4, %c0_26, %c0_27] : memref<8x32x32xf32, #tpu.memory_space<vmem>>, vector<1x32x32xf32>
    %38 = vector.shape_cast %37 : vector<1x32x32xf32> to vector<32x32xf32>
    %c5 = arith.constant 5 : index
    %c0_28 = arith.constant 0 : index
    %c0_29 = arith.constant 0 : index
    %39 = vector.load %arg2[%c5, %c0_28, %c0_29] : memref<8x32x32xf32, #tpu.memory_space<vmem>>, vector<1x32x32xf32>
    %40 = vector.shape_cast %39 : vector<1x32x32xf32> to vector<32x32xf32>
    %c4_30 = arith.constant 4 : index
    %c0_31 = arith.constant 0 : index
    %41 = vector.load %arg3[%c4_30, %c0_31] : memref<8x32xf32, #tpu.memory_space<vmem>>, vector<1x32xf32>
    %c5_32 = arith.constant 5 : index
    %c0_33 = arith.constant 0 : index
    %42 = vector.load %arg3[%c5_32, %c0_33] : memref<8x32xf32, #tpu.memory_space<vmem>>, vector<1x32xf32>
    %cst_34 = arith.constant dense<0.000000e+00> : vector<128x32xf32>
    %43 = tpu.matmul %36, %38, %cst_34 {dimension_numbers = #tpu.dot_dimension_numbers<[1], [0], [0], [1], [0, 0, 1, 1], [], []>} : vector<128x32xf32>, vector<32x32xf32>, vector<128x32xf32> -> vector<128x32xf32>
    %44 = vector.broadcast %41 : vector<1x32xf32> to vector<128x32xf32>
    %45 = arith.addf %43, %44 : vector<128x32xf32>
    %46 = math.tanh %45 : vector<128x32xf32>
    %cst_35 = arith.constant dense<0.000000e+00> : vector<128x32xf32>
    %47 = tpu.matmul %46, %40, %cst_35 {dimension_numbers = #tpu.dot_dimension_numbers<[1], [0], [0], [1], [0, 0, 1, 1], [], []>} : vector<128x32xf32>, vector<32x32xf32>, vector<128x32xf32> -> vector<128x32xf32>
    %48 = vector.broadcast %42 : vector<1x32xf32> to vector<128x32xf32>
    %49 = arith.addf %47, %48 : vector<128x32xf32>
    %50 = vector.extract_strided_slice %6 {offsets = [0, 64], sizes = [128, 32], strides = [1, 1]} : vector<128x128xf32> to vector<128x32xf32>
    %51 = arith.mulf %50, %49 : vector<128x32xf32>
    %c6 = arith.constant 6 : index
    %c0_36 = arith.constant 0 : index
    %c0_37 = arith.constant 0 : index
    %52 = vector.load %arg2[%c6, %c0_36, %c0_37] : memref<8x32x32xf32, #tpu.memory_space<vmem>>, vector<1x32x32xf32>
    %53 = vector.shape_cast %52 : vector<1x32x32xf32> to vector<32x32xf32>
    %c7 = arith.constant 7 : index
    %c0_38 = arith.constant 0 : index
    %c0_39 = arith.constant 0 : index
    %54 = vector.load %arg2[%c7, %c0_38, %c0_39] : memref<8x32x32xf32, #tpu.memory_space<vmem>>, vector<1x32x32xf32>
    %55 = vector.shape_cast %54 : vector<1x32x32xf32> to vector<32x32xf32>
    %c6_40 = arith.constant 6 : index
    %c0_41 = arith.constant 0 : index
    %56 = vector.load %arg3[%c6_40, %c0_41] : memref<8x32xf32, #tpu.memory_space<vmem>>, vector<1x32xf32>
    %c7_42 = arith.constant 7 : index
    %c0_43 = arith.constant 0 : index
    %57 = vector.load %arg3[%c7_42, %c0_43] : memref<8x32xf32, #tpu.memory_space<vmem>>, vector<1x32xf32>
    %cst_44 = arith.constant dense<0.000000e+00> : vector<128x32xf32>
    %58 = tpu.matmul %51, %53, %cst_44 {dimension_numbers = #tpu.dot_dimension_numbers<[1], [0], [0], [1], [0, 0, 1, 1], [], []>} : vector<128x32xf32>, vector<32x32xf32>, vector<128x32xf32> -> vector<128x32xf32>
    %59 = vector.broadcast %56 : vector<1x32xf32> to vector<128x32xf32>
    %60 = arith.addf %58, %59 : vector<128x32xf32>
    %61 = math.tanh %60 : vector<128x32xf32>
    %cst_45 = arith.constant dense<0.000000e+00> : vector<128x32xf32>
    %62 = tpu.matmul %61, %55, %cst_45 {dimension_numbers = #tpu.dot_dimension_numbers<[1], [0], [0], [1], [0, 0, 1, 1], [], []>} : vector<128x32xf32>, vector<32x32xf32>, vector<128x32xf32> -> vector<128x32xf32>
    %63 = vector.broadcast %57 : vector<1x32xf32> to vector<128x32xf32>
    %64 = arith.addf %62, %63 : vector<128x32xf32>
    %65 = vector.extract_strided_slice %6 {offsets = [0, 96], sizes = [128, 32], strides = [1, 1]} : vector<128x128xf32> to vector<128x32xf32>
    %66 = arith.mulf %65, %64 : vector<128x32xf32>
    %c0_46 = arith.constant 0 : index
    %c0_47 = arith.constant 0 : index
    %67 = vector.load %arg7[%c0_46, %c0_47] : memref<3x32xf32, #tpu.memory_space<vmem>>, vector<1x32xf32>
    %c1_48 = arith.constant 1 : index
    %c0_49 = arith.constant 0 : index
    %68 = vector.load %arg7[%c1_48, %c0_49] : memref<3x32xf32, #tpu.memory_space<vmem>>, vector<1x32xf32>
    %c2_50 = arith.constant 2 : index
    %c0_51 = arith.constant 0 : index
    %69 = vector.load %arg7[%c2_50, %c0_51] : memref<3x32xf32, #tpu.memory_space<vmem>>, vector<1x1xf32>
    %c0_52 = arith.constant 0 : index
    %c0_53 = arith.constant 0 : index
    %70 = vector.load %arg6[%c0_52, %c0_53] : memref<32x32xf32, #tpu.memory_space<vmem>>, vector<32x32xf32>
    %cst_54 = arith.constant dense<0.000000e+00> : vector<128x32xf32>
    %71 = tpu.matmul %66, %70, %cst_54 {dimension_numbers = #tpu.dot_dimension_numbers<[1], [0], [0], [1], [0, 0, 1, 1], [], []>} : vector<128x32xf32>, vector<32x32xf32>, vector<128x32xf32> -> vector<128x32xf32>
    %72 = vector.broadcast %67 : vector<1x32xf32> to vector<128x32xf32>
    %73 = arith.addf %71, %72 : vector<128x32xf32>
    %74 = math.tanh %73 : vector<128x32xf32>
    %75 = vector.broadcast %68 : vector<1x32xf32> to vector<128x32xf32>
    %76 = arith.mulf %74, %75 : vector<128x32xf32>
    %cst_55 = arith.constant dense<0.000000e+00> : vector<128xf32>
    %77 = vector.multi_reduction <add>, %76, %cst_55 [1] : vector<128x32xf32> to vector<128xf32>
    %78 = vector.shape_cast %77 : vector<128xf32> to vector<128x1xf32>
    %79 = vector.broadcast %69 : vector<1x1xf32> to vector<128x1xf32>
    %80 = arith.addf %78, %79 : vector<128x1xf32>
    %c0_56 = arith.constant 0 : index
    %c0_57 = arith.constant 0 : index
    %81 = vector.load %arg8[%c0_56, %c0_57] : memref<128x1xf32, #tpu.memory_space<vmem>>, vector<128x1xf32>
    tpu.vector_store %arg8[%c0_56, %c0_57], %80 {strides = array<i32>} : memref<128x1xf32, #tpu.memory_space<vmem>>, vector<128x1xf32>,
    return
  }
  func.func @transform_0(%arg0: i32) -> (i32, i32) {
    %c0_i32 = arith.constant 0 : i32
    %c0_i32_0 = arith.constant 0 : i32
    return %arg0, %c0_i32 : i32, i32
  }
  func.func @transform_1(%arg0: i32) -> (i32, i32, i32) {
    %c0_i32 = arith.constant 0 : i32
    %c0_i32_0 = arith.constant 0 : i32
    %c0_i32_1 = arith.constant 0 : i32
    %c0_i32_2 = arith.constant 0 : i32
    return %c0_i32, %c0_i32_0, %c0_i32_1 : i32, i32, i32
  }
  func.func @transform_2(%arg0: i32) -> (i32, i32) {
    %c0_i32 = arith.constant 0 : i32
    %c0_i32_0 = arith.constant 0 : i32
    %c0_i32_1 = arith.constant 0 : i32
    return %c0_i32, %c0_i32_0 : i32, i32
  }
  func.func @transform_3(%arg0: i32) -> (i32, i32) {
    %c0_i32 = arith.constant 0 : i32
    %c0_i32_0 = arith.constant 0 : i32
    %c0_i32_1 = arith.constant 0 : i32
    return %c0_i32, %c0_i32_0 : i32, i32
  }
  func.func @transform_4(%arg0: i32) -> (i32, i32) {
    %c0_i32 = arith.constant 0 : i32
    %c0_i32_0 = arith.constant 0 : i32
    %c0_i32_1 = arith.constant 0 : i32
    return %c0_i32, %c0_i32_0 : i32, i32
  }
  func.func @transform_5(%arg0: i32) -> (i32, i32) {
    %c0_i32 = arith.constant 0 : i32
    %c0_i32_0 = arith.constant 0 : i32
    %c0_i32_1 = arith.constant 0 : i32
    return %c0_i32, %c0_i32_0 : i32, i32
  }
  func.func @transform_6(%arg0: i32) -> (i32, i32) {
    %c0_i32 = arith.constant 0 : i32
    %c0_i32_0 = arith.constant 0 : i32
    %c0_i32_1 = arith.constant 0 : i32
    return %c0_i32, %c0_i32_0 : i32, i32
  }
  func.func @transform_7(%arg0: i32) -> (i32, i32) {
    %c0_i32 = arith.constant 0 : i32
    %c0_i32_0 = arith.constant 0 : i32
    return %arg0, %c0_i32 : i32, i32
  }
}

</mosaic_0001>

<bundles_post_ra>
// kernel: tpu_custom_call.1
= control target key start
LH: loop header
LB: loop body
LE: loop exit
PB: predicated region body
PF: predicated region fallthrough
CT: control target
= control target key end

     0   :  { %12 = vsyncpa [#allocation3], 0  ;;  %s3510_s0 = inlined_call_operand.vmem [shape: f32[256,32], index: 0, kind: input, shape index: {}]   ;;  %s3511_s1 = inlined_call_operand.vmem [shape: f32[8,32,32], index: 1, kind: input, shape index: {}]   ;;  %s3512_s2 = inlined_call_operand.hbm [shape: f32[8,32], index: 2, kind: input, shape index: {}]   ;;  %s3513_s3 = inlined_call_operand.vmem [shape: f32[32,128], index: 3, kind: input, shape index: {}]   ;;  %s3514_s4 = inlined_call_operand.vmem [shape: f32[1,128], index: 4, kind: input, shape index: {}]   ;;  %s3515_s5 = inlined_call_operand.vmem [shape: f32[32,32], index: 5, kind: input, shape index: {}]   ;;  %s3516_s6 = inlined_call_operand.hbm [shape: f32[3,32], index: 6, kind: input, shape index: {}]   ;;  %s3517_s7 = inlined_call_operand.vmem [shape: f32[256,1], index: 7, kind: output, shape index: {}]  }
   0x1   :  { %13 = vsyncpa [#allocation5], 0  ;;  %s2675_s24 = smov 0  }
   0x2 LB: > { %s217_s27 = sshll.u32 %s3512_s2, 4  ;;  %s2107_s28 = sadd.s32 4294967295, %s2628_s24   ;;  %s2628_s24 = sphi %s2675_s24, %s19_s24   ;;  %s218_s27 = int_to_ptr.hbm [resolvable:$true] %s217_s27 }
   0x3   : > { %p2109_p0 = scmp.ge.s32.totalorder %s2628_s24, 1  ;;  %p202_p1 = scmp.lt.s32.totalorder %s2628_s24, 3 }
   0x4   : > { %p2686_p2 = scmp.eq.s32.totalorder %s2107_s28, 0  ;;  %s2630_s8 = smov [#allocation2]  }
   0x5   : > { %p2690_p3 = pnand %p2109_p0, %p202_p1  ;;  %s219_s9 = sshll.u32 %s2630_s8, 4  ;;  %s220_s9 = int_to_ptr.vmem [resolvable:$true] %s219_s9 }
   0x6   : > { %s238_s12 = sshll.u32 %s3516_s6, 4  ;;  %s2631_s13 = smov [#allocation4]   ;;  %s239_s12 = int_to_ptr.hbm [resolvable:$true] %s238_s12 }
   0x7   : > { %p2326_p4 = pneg %p2690_p3  ;;  %s240_s14 = sshll.u32 %s2631_s13, 4  ;;  %s241_s14 = int_to_ptr.vmem [resolvable:$true] %s240_s14 }
   0x8   : > { %262 = sbr.rel (%p2690_p3) target bundleno = 2265 (0x8d9), region = 48 }
   0x9   : > { %p2327_p5 = pnand %p2686_p2, %p2326_p4 }
   0xb   : > { %2329 = dma.hbm_to_vmem [thread:$0]  (!%p2327_p5), %s218_s27, 128, %s220_s9, [#allocation3]  }
   0xc   : > { %2332 = dma.hbm_to_vmem [thread:$0]  (!%p2327_p5), %s239_s12, 64, %s241_s14, [#allocation5]  }
   0xd   : > { %2619 = dma.done.wait (%p2686_p2), [#allocation3], 128  }
   0xe   : > { %2621 = vsyncadd (%p2686_p2), [#allocation3], 4294967168 }
   0xf   : > { %2623 = dma.done.wait (%p2686_p2), [#allocation5], 64  }
  0x10   : > { %2625 = vsyncadd (%p2686_p2), [#allocation5], 4294967232  ;;  %s2116_s15 = sshll.u32 %s2107_s28, 4  ;;  %v469_v0 = vld [vmem:[%s3511_s1 + $0x18] sm:$0xff]  ;;  %v468_v1 = vld [vmem:[%s3511_s1 + $0x10] sm:$0xff]  ;;  %vm336_vm0 = vcmask 261120  }
  0x11   : > { %p301_p6 = scmp.lt.s32.totalorder %s2116_s15, 31  ;;  %490 = vmatpush.msra.mxu1 %v469_v0  ;;  %2314 = vmatpush.msra.mxu3 %v469_v0  ;;  %v467_v2 = vld [vmem:[%s3511_s1 + $0x8] sm:$0xff]  ;;  %v466_v3 = vld [vmem:[%s3511_s1] sm:$0xff]  ;;  %v331_v9 = vld [vmem:[%s3513_s3 + $0x18] sm:$0xff]  ;;  %s2632_s22 = smov 32   ;;  %vm2012_vm1 = vcmask 7168  }
  0x12   : > { %v330_v10 = vld [vmem:[%s3513_s3 + $0x10] sm:$0xff]  ;;  %2310 = vmatpush.msra.mxu2 %v331_v9  ;;  %v329_v11 = vld [vmem:[%s3513_s3 + $0x8] sm:$0xff]  ;;  %397 = vmatpush.msra.mxu0 %v331_v9  ;;  %v328_v12 = vld [vmem:[%s3513_s3] sm:$0xff]  ;;  %s2633_s25 = smov 96   ;;  %s2634_s20 = smov 64  }
  0x13   : > { %s3521_s15 = smov (!%p301_p6, %s2116_s15), 31  ;;  %491 = vmatpush.msra.mxu1 %v468_v1  ;;  %2315 = vmatpush.msra.mxu3 %v468_v1  ;;  %v2139_v15 = vld [vmem:[%s3511_s1 + $0x38] sm:$0xff]  ;;  %v2138_v16 = vld [vmem:[%s3511_s1 + $0x30] sm:$0xff]  ;;  %v2137_v17 = vld [vmem:[%s3511_s1 + $0x28] sm:$0xff] }
  0x14   : > { %s2117_s16 = sshll.u32 %s3521_s15, 3  ;;  %2311 = vmatpush.msra.mxu2 %v330_v10  ;;  %398 = vmatpush.msra.mxu0 %v330_v10  ;;  %v2136_v22 = vld [vmem:[%s3511_s1 + $0x20] sm:$0xff]  ;;  %v2175_v50 = vld [vmem:[%s3511_s1 + $0x58] sm:$0xff]  ;;  %v2174_v59 = vld [vmem:[%s3511_s1 + $0x50] sm:$0xff] }
  0x15   : > { %s2725_s23 = scalar_lea.vmem %s3510_s0, %s2117_s16  ;;  %492 = vmatpush.msra.mxu1 %v467_v2  ;;  %2316 = vmatpush.msra.mxu3 %v467_v2  ;;  %v2805_v28 = vld [vmem:[#allocation2] ss:$0 sm:$0xff]  ;;  %s3433_s30 = scalar_lea.vmem %s3517_s7, %s2117_s16 }
  0x16   : > { %v312_v4 = vld [vmem:[%s2725_s23] sm:$0xff]  ;;  %v313_v5 = vld [vmem:[%s2725_s23 + $0x8] sm:$0xff]  ;;  %v314_v6 = vld [vmem:[%s2725_s23 + $0x10] sm:$0xff]  ;;  %2312 = vmatpush.msra.mxu2 %v329_v11  ;;  %399 = vmatpush.msra.mxu0 %v329_v11 }
  0x17   : > { %493 = vmatpush.msra.mxu1 %v466_v3  ;;  %2317 = vmatpush.msra.mxu3 %v466_v3  ;;  %v315_v7 = vld [vmem:[%s2725_s23 + $0x18] sm:$0xff]  ;;  %v320_v8 = vld [vmem:[%s2725_s23 + $0x40] sm:$0xff]  ;;  %v321_v14 = vld [vmem:[%s2725_s23 + $0x48] sm:$0xff] }
  0x18   : > { %2140 = vmatmul.msk.f32.vlgmr.msra.gmra.mxu1 %vm336_vm0, %v312_v4  ;;  %2148 = vmatmul.msk.f32.vlgmr.msra.gmra.mxu3 %vm336_vm0, %v320_v8  ;;  %v316_v13 = vld [vmem:[%s2725_s23 + $0x20] sm:$0xff]  ;;  %v317_v18 = vld [vmem:[%s2725_s23 + $0x28] sm:$0xff]  ;;  %v322_v19 = vld [vmem:[%s2725_s23 + $0x50] sm:$0xff] }
  0x19   : > { %2313 = vmatpush.msra.mxu2 %v328_v12  ;;  %400 = vmatpush.msra.mxu0 %v328_v12  ;;  %v318_v20 = vld [vmem:[%s2725_s23 + $0x30] sm:$0xff]  ;;  %v323_v21 = vld [vmem:[%s2725_s23 + $0x58] sm:$0xff]  ;;  %v324_v24 = vld [vmem:[%s2725_s23 + $0x60] sm:$0xff] }
  0x1a   : > { %2128 = vmatmul.msk.f32.vlgmr.msra.gmra.mxu2 %vm336_vm0, %v320_v8  ;;  %2120 = vmatmul.msk.f32.vlgmr.msra.gmra.mxu0 %vm336_vm0, %v312_v4  ;;  %v319_v23 = vld [vmem:[%s2725_s23 + $0x38] sm:$0xff]  ;;  %v325_v25 = vld [vmem:[%s2725_s23 + $0x68] sm:$0xff]  ;;  %v326_v26 = vld [vmem:[%s2725_s23 + $0x70] sm:$0xff] }
  0x1b   : > { %620 = vmatpush.msrb.mxu2 %v2139_v15  ;;  %v327_v27 = vld [vmem:[%s2725_s23 + $0x78] sm:$0xff]  ;;  %762 = vmatpush.msrb.mxu3 %v2175_v50  ;;  %v2173_v3 = vld [vmem:[%s3511_s1 + $0x48] sm:$0xff]  ;;  %v2172_v11 = vld [vmem:[%s3511_s1 + $0x40] sm:$0xff] }
  0x1d   : > { %621 = vmatpush.msrb.mxu2 %v2138_v16  ;;  %763 = vmatpush.msrb.mxu3 %v2174_v59 }
  0x1f   : > { %622 = vmatpush.msrb.mxu2 %v2137_v17  ;;  %764 = vmatpush.msrb.mxu3 %v2173_v3 }
  0x20   : > { %2141 = vmatmul.msk.f32.gmra.mxu1 %vm336_vm0, %v313_v5  ;;  %2149 = vmatmul.msk.f32.gmra.mxu3 %vm336_vm0, %v321_v14 }
  0x21   : > { %623 = vmatpush.msrb.mxu2 %v2136_v22  ;;  %765 = vmatpush.msrb.mxu3 %v2172_v11  ;;  %v2179_v11 = vld [vmem:[%s3511_s1 + $0x78] sm:$0xff] }
  0x22   : > { %2129 = vmatmul.msk.f32.gmra.mxu2 %vm336_vm0, %v321_v14  ;;  %2121 = vmatmul.msk.f32.gmra.mxu0 %vm336_vm0, %v313_v5 }
  0x23   : > { %892 = vmatpush.msrb.mxu0 %v2179_v11 }
  0x28   : > { %2142 = vmatmul.msk.f32.gmra.mxu1 %vm336_vm0, %v314_v6  ;;  %2150 = vmatmul.msk.f32.gmra.mxu3 %vm336_vm0, %v322_v19 }
  0x2a   : > { %2130 = vmatmul.msk.f32.gmra.mxu2 %vm336_vm0, %v322_v19  ;;  %2122 = vmatmul.msk.f32.gmra.mxu0 %vm336_vm0, %v314_v6 }
  0x30   : > { %2143 = vmatmul.msk.f32.gmra.mxu1 %vm336_vm0, %v315_v7  ;;  %2151 = vmatmul.msk.f32.gmra.mxu3 %vm336_vm0, %v323_v21 }
  0x32   : > { %2131 = vmatmul.msk.f32.gmra.mxu2 %vm336_vm0, %v323_v21  ;;  %2123 = vmatmul.msk.f32.gmra.mxu0 %vm336_vm0, %v315_v7 }
  0x38   : > { %2144 = vmatmul.msk.f32.gmra.mxu1 %vm336_vm0, %v316_v13  ;;  %2152 = vmatmul.msk.f32.gmra.mxu3 %vm336_vm0, %v324_v24 }
  0x3a   : > { %2132 = vmatmul.msk.f32.gmra.mxu2 %vm336_vm0, %v324_v24  ;;  %2124 = vmatmul.msk.f32.gmra.mxu0 %vm336_vm0, %v316_v13 }
  0x40   : > { %2145 = vmatmul.msk.f32.gmra.mxu1 %vm336_vm0, %v317_v18  ;;  %2153 = vmatmul.msk.f32.gmra.mxu3 %vm336_vm0, %v325_v25 }
  0x42   : > { %2133 = vmatmul.msk.f32.gmra.mxu2 %vm336_vm0, %v325_v25  ;;  %2125 = vmatmul.msk.f32.gmra.mxu0 %vm336_vm0, %v317_v18 }
  0x48   : > { %2146 = vmatmul.msk.f32.gmra.mxu1 %vm336_vm0, %v318_v20  ;;  %2154 = vmatmul.msk.f32.gmra.mxu3 %vm336_vm0, %v326_v26 }
  0x4a   : > { %2134 = vmatmul.msk.f32.gmra.mxu2 %vm336_vm0, %v326_v26  ;;  %2126 = vmatmul.msk.f32.gmra.mxu0 %vm336_vm0, %v318_v20  ;;  %v2867_v26 = vld [vmem:[%s3514_s4] ss:$0 sm:$0xff] }
  0x50   : > { %2147 = vmatmul.msk.f32.gmra.mxu1 %vm336_vm0, %v319_v23  ;;  %2155 = vmatmul.msk.f32.gmra.mxu3 %vm336_vm0, %v327_v27 }
  0x52   : > { %2135 = vmatmul.msk.f32.gmra.mxu2 %vm336_vm0, %v327_v27  ;;  %2127 = vmatmul.msk.f32.gmra.mxu0 %vm336_vm0, %v319_v23 }
  0x95   : > { %v495_v29 = vpop.f32.mrf.mxu1 }
  0x96   : > { %v496_v30 = vadd.f32 %v2805_v28, %v495_v29 }
  0x97   : > { %v402_v20 = vpop.f32.mrf.mxu0 }
  0x98   : > { %2362 = vtanh.f32 %v496_v30  ;;  %v403_v29 = vadd.f32 %v2867_v26, %v402_v20  ;;  %v2873_v30 = vld [vmem:[#allocation2 + $0x1] ss:$0 sm:$0xff] }
  0x9b   : > { %v519_v46 = vpop.f32.mrf.mxu3 }
  0x9c   : > { %v520_v55 = vadd.f32 %v2805_v28, %v519_v46 }
  0x9d   : > { %v498_v31 = vpop.f32.mrf.mxu1  ;;  %v2826_v56 = vpop.f32.mrf.mxu2 }
  0x9e   : > { %v2363_v32 = vpop.eup %2362  ;;  %v499_v33 = vadd.f32 %v2805_v28, %v498_v31 }
  0x9f   : > { %2156 = vmatmul.msk.f32.vlgmr.msrb.gmra.mxu2 %vm336_vm0, %v2363_v32  ;;  %v405_v24 = vpop.f32.mrf.mxu0 }
  0xa0   : > { %2364 = vtanh.f32 %v499_v33  ;;  %v406_v31 = vadd.f32 %v2867_v26, %v405_v24 }
  0xa3   : > { %v522_v51 = vpop.f32.mrf.mxu3 }
  0xa4   : > { %v523_v60 = vadd.f32 %v2805_v28, %v522_v51 }
  0xa5   : > { %v501_v34 = vpop.f32.mrf.mxu1  ;;  %v2833_v62 = vpop.f32.mrf.mxu2 }
  0xa6   : > { %v2365_v35 = vpop.eup %2364  ;;  %v502_v36 = vadd.f32 %v2805_v28, %v501_v34 }
  0xa7   : > { %2157 = vmatmul.msk.f32.gmra.mxu2 %vm336_vm0, %v2365_v35 }
  0xa8   : > { %2366 = vtanh.f32 %v502_v36 }
  0xab   : > { %v525_v57 = vpop.f32.mrf.mxu3 }
  0xac   : > { %v526_v0 = vadd.f32 %v2805_v28, %v525_v57 }
  0xad   : > { %v504_v37 = vpop.f32.mrf.mxu1  ;;  %v2837_v2 = vpop.f32.mrf.mxu2 }
  0xae   : > { %v2367_v38 = vpop.eup %2366  ;;  %v505_v39 = vadd.f32 %v2805_v28, %v504_v37 }
  0xaf   : > { %2158 = vmatmul.msk.f32.gmra.mxu2 %vm336_vm0, %v2367_v38 }
  0xb0   : > { %2368 = vtanh.f32 %v505_v39 }
  0xb3   : > { %v528_v63 = vpop.f32.mrf.mxu3 }
  0xb4   : > { %v529_v5 = vadd.f32 %v2805_v28, %v528_v63 }
  0xb5   : > { %v507_v40 = vpop.f32.mrf.mxu1  ;;  %v2845_v7 = vpop.f32.mrf.mxu2 }
  0xb6   : > { %v2369_v41 = vpop.eup %2368  ;;  %v508_v42 = vadd.f32 %v2805_v28, %v507_v40 }
  0xb7   : > { %2159 = vmatmul.msk.f32.gmra.mxu2 %vm336_vm0, %v2369_v41 }
  0xb8   : > { %2370 = vtanh.f32 %v508_v42 }
  0xbb   : > { %v531_v4 = vpop.f32.mrf.mxu3 }
  0xbc   : > { %v532_v8 = vadd.f32 %v2805_v28, %v531_v4 }
  0xbd   : > { %v510_v43 = vpop.f32.mrf.mxu1  ;;  %v2853_v13 = vpop.f32.mrf.mxu2 }
  0xbe   : > { %v2371_v44 = vpop.eup %2370  ;;  %v511_v45 = vadd.f32 %v2805_v28, %v510_v43 }
  0xbf   : > { %2160 = vmatmul.msk.f32.gmra.mxu2 %vm336_vm0, %v2371_v44 }
  0xc0   : > { %2372 = vtanh.f32 %v511_v45 }
  0xc3   : > { %v534_v9 = vpop.f32.mrf.mxu3 }
  0xc4   : > { %v535_v12 = vadd.f32 %v2805_v28, %v534_v9 }
  0xc5   : > { %v513_v47 = vpop.f32.mrf.mxu1  ;;  %v2857_v18 = vpop.f32.mrf.mxu2 }
  0xc6   : > { %v2373_v48 = vpop.eup %2372  ;;  %v514_v49 = vadd.f32 %v2805_v28, %v513_v47 }
  0xc7   : > { %2161 = vmatmul.msk.f32.gmra.mxu2 %vm336_vm0, %v2373_v48 }
  0xc8   : > { %2374 = vtanh.f32 %v514_v49 }
  0xcb   : > { %v537_v15 = vpop.f32.mrf.mxu3 }
  0xcc   : > { %v538_v16 = vadd.f32 %v2805_v28, %v537_v15 }
  0xcd   : > { %v516_v52 = vpop.f32.mrf.mxu1  ;;  %v2861_v23 = vpop.f32.mrf.mxu2 }
  0xce   : > { %v2375_v53 = vpop.eup %2374  ;;  %v517_v54 = vadd.f32 %v2805_v28, %v516_v52 }
  0xcf   : > { %2162 = vmatmul.msk.f32.gmra.mxu2 %vm336_vm0, %v2375_v53 }
  0xd0   : > { %2376 = vtanh.f32 %v517_v54 }
  0xd1   : > { %2378 = vtanh.f32 %v520_v55 }
  0xd2   : > { %2380 = vtanh.f32 %v523_v60 }
  0xd3   : > { %2382 = vtanh.f32 %v526_v0  ;;  %v540_v19 = vpop.f32.mrf.mxu3 }
  0xd4   : > { %2384 = vtanh.f32 %v529_v5  ;;  %v541_v21 = vadd.f32 %v2805_v28, %v540_v19  ;;  %v408_v28 = vpop.f32.mrf.mxu0  ;;  %v430_v19 = vadd.f32 %v2867_v26, %v2833_v62 }
  0xd5   : > { %2386 = vtanh.f32 %v532_v8  ;;  %v2870_v27 = vpop.f32.mrf.mxu2  ;;  %v409_v37 = vadd.f32 %v2867_v26, %v408_v28 }
  0xd6   : > { %v2377_v58 = vpop.eup %2376  ;;  %2388 = vtanh.f32 %v535_v12 }
  0xd7   : > { %2163 = vmatmul.msk.f32.gmra.mxu2 %vm336_vm0, %v2377_v58  ;;  %v2379_v61 = vpop.eup %2378  ;;  %2390 = vtanh.f32 %v538_v16 }
  0xd8   : > { %v2381_v1 = vpop.eup %2380  ;;  %2392 = vtanh.f32 %v541_v21 }
  0xd9   : > { %v2383_v6 = vpop.eup %2382  ;;  %2394 = vtanh.f32 %v403_v29 }
  0xda   : > { %v2385_v10 = vpop.eup %2384  ;;  %2396 = vtanh.f32 %v406_v31 }
  0xdb   : > { %v2387_v14 = vpop.eup %2386  ;;  %2398 = vtanh.f32 %v409_v37  ;;  %v2177_v37 = vld [vmem:[%s3511_s1 + $0x68] sm:$0xff] }
  0xdc   : > { %v2389_v17 = vpop.eup %2388  ;;  %v411_v36 = vpop.f32.mrf.mxu0 }
  0xdd   : > { %v2391_v22 = vpop.eup %2390  ;;  %v412_v43 = vadd.f32 %v2867_v26, %v411_v36 }
  0xde   : > { %v2393_v25 = vpop.eup %2392 }
  0xdf   : > { %2164 = vmatmul.msk.f32.gmra.mxu2 %vm336_vm0, %v2379_v61  ;;  %v2876_v32 = vpop.eup %2394  ;;  %2400 = vtanh.f32 %v412_v43  ;;  %v2176_v43 = vld [vmem:[%s3511_s1 + $0x60] sm:$0xff] }
  0xe0   : > { %v2882_v38 = vpop.eup %2396 }
  0xe1   : > { %v2888_v44 = vpop.eup %2398 }
  0xe4   : > { %v414_v42 = vpop.f32.mrf.mxu0 }
  0xe5   : > { %v415_v48 = vadd.f32 %v2867_v26, %v414_v42  ;;  %v2894_v50 = vpop.eup %2400 }
  0xe7   : > { %2165 = vmatmul.msk.f32.gmra.mxu2 %vm336_vm0, %v2381_v1  ;;  %2402 = vtanh.f32 %v415_v48 }
  0xec   : > { %v417_v49 = vpop.f32.mrf.mxu0 }
  0xed   : > { %v418_v54 = vadd.f32 %v2867_v26, %v417_v49  ;;  %v2900_v55 = vpop.eup %2402  ;;  %v445_v49 = vadd.f32 %v2867_v26, %v2861_v23 }
  0xef   : > { %2166 = vmatmul.msk.f32.gmra.mxu2 %vm336_vm0, %v2383_v6  ;;  %2404 = vtanh.f32 %v418_v54  ;;  %v448_v54 = vadd.f32 %v2867_v26, %v2870_v27 }
  0xf4   : > { %v420_v59 = vpop.f32.mrf.mxu0 }
  0xf5   : > { %v421_v61 = vadd.f32 %v2867_v26, %v420_v59  ;;  %v2906_v63 = vpop.eup %2404 }
  0xf7   : > { %2167 = vmatmul.msk.f32.gmra.mxu2 %vm336_vm0, %v2385_v10  ;;  %2406 = vtanh.f32 %v421_v61 }
  0xfc   : > { %v423_v4 = vpop.f32.mrf.mxu0 }
  0xfd   : > { %v424_v5 = vadd.f32 %v2867_v26, %v423_v4  ;;  %v2912_v6 = vpop.eup %2406 }
  0xff   : > { %2168 = vmatmul.msk.f32.gmra.mxu2 %vm336_vm0, %v2387_v14  ;;  %2408 = vtanh.f32 %v424_v5  ;;  %v427_v14 = vadd.f32 %v2867_v26, %v2826_v56  ;;  %v2178_v56 = vld [vmem:[%s3511_s1 + $0x70] sm:$0xff] }
 0x100   : > { %893 = vmatpush.msrb.mxu0 %v2178_v56 }
 0x101   : > { %2410 = vtanh.f32 %v427_v14 }
 0x102   : > { %2412 = vtanh.f32 %v430_v19  ;;  %894 = vmatpush.msrb.mxu0 %v2177_v37 }
 0x104   : > { %895 = vmatpush.msrb.mxu0 %v2176_v43 }
 0x105   : > { %v2920_v12 = vpop.eup %2408 }
 0x107   : > { %2169 = vmatmul.msk.f32.gmra.mxu2 %vm336_vm0, %v2389_v17 }
 0x10f   : > { %2170 = vmatmul.msk.f32.gmra.mxu2 %vm336_vm0, %v2391_v22  ;;  %v2930_v22 = vpop.eup %2410 }
 0x110   : > { %v2940_v28 = vpop.eup %2412 }
 0x117   : > { %2171 = vmatmul.msk.f32.gmra.mxu2 %vm336_vm0, %v2393_v25  ;;  %v433_v25 = vadd.f32 %v2867_v26, %v2837_v2 }
 0x119   : > { %2414 = vtanh.f32 %v433_v25 }
 0x11f   : > { %v2947_v36 = vpop.eup %2414 }
 0x122   : > { %v625_v33 = vpop.f32.mrf.mxu2 }
 0x123   : > { %v626_v34 = vadd.f32 %v2873_v30, %v625_v33  ;;  %v436_v33 = vadd.f32 %v2867_v26, %v2845_v7 }
 0x125   : > { %v673_v35 = vmul.f32 %v2876_v32, %v626_v34  ;;  %2416 = vtanh.f32 %v436_v33 }
 0x127   : > { %2180 = vmatmul.msk.f32.vlgmr.msrb.gmra.mxu3 %vm336_vm0, %v673_v35 }
 0x12a   : > { %v628_v39 = vpop.f32.mrf.mxu2 }
 0x12b   : > { %v629_v40 = vadd.f32 %v2873_v30, %v628_v39  ;;  %v439_v39 = vadd.f32 %v2867_v26, %v2853_v13 }
 0x12d   : > { %v674_v41 = vmul.f32 %v2882_v38, %v629_v40  ;;  %2418 = vtanh.f32 %v439_v39 }
 0x12f   : > { %2181 = vmatmul.msk.f32.gmra.mxu3 %vm336_vm0, %v674_v41  ;;  %v2957_v41 = vpop.eup %2416 }
 0x132   : > { %v631_v45 = vpop.f32.mrf.mxu2 }
 0x133   : > { %v632_v46 = vadd.f32 %v2873_v30, %v631_v45  ;;  %v442_v45 = vadd.f32 %v2867_v26, %v2857_v18  ;;  %v2990_v26 = vld [vmem:[#allocation2 + $0x2] ss:$0 sm:$0xff] }
 0x135   : > { %v675_v47 = vmul.f32 %v2888_v44, %v632_v46  ;;  %2420 = vtanh.f32 %v442_v45 }
 0x136   : > { %2422 = vtanh.f32 %v445_v49 }
 0x137   : > { %2182 = vmatmul.msk.f32.gmra.mxu3 %vm336_vm0, %v675_v47  ;;  %v2967_v47 = vpop.eup %2418  ;;  %2424 = vtanh.f32 %v448_v54 }
 0x13a   : > { %v634_v51 = vpop.f32.mrf.mxu2 }
 0x13b   : > { %v635_v52 = vadd.f32 %v2873_v30, %v634_v51 }
 0x13d   : > { %v676_v53 = vmul.f32 %v2894_v50, %v635_v52 }
 0x13f   : > { %2183 = vmatmul.msk.f32.gmra.mxu3 %vm336_vm0, %v676_v53  ;;  %v2974_v53 = vpop.eup %2420 }
 0x140   : > { %v2981_v59 = vpop.eup %2422 }
 0x142   : > { %v637_v57 = vpop.f32.mrf.mxu2 }
 0x143   : > { %v638_v58 = vadd.f32 %v2873_v30, %v637_v57 }
 0x145   : > { %v677_v60 = vmul.f32 %v2900_v55, %v638_v58 }
 0x147   : > { %2184 = vmatmul.msk.f32.gmra.mxu3 %vm336_vm0, %v677_v60 }
 0x14a   : > { %v640_v0 = vpop.f32.mrf.mxu2 }
 0x14b   : > { %v641_v1 = vadd.f32 %v2873_v30, %v640_v0  ;;  %v2986_v0 = vpop.eup %2424 }
 0x14d   : > { %v678_v3 = vmul.f32 %v2906_v63, %v641_v1 }
 0x14f   : > { %2185 = vmatmul.msk.f32.gmra.mxu3 %vm336_vm0, %v678_v3 }
 0x152   : > { %v643_v8 = vpop.f32.mrf.mxu2 }
 0x153   : > { %v644_v9 = vadd.f32 %v2873_v30, %v643_v8 }
 0x155   : > { %v679_v10 = vmul.f32 %v2912_v6, %v644_v9 }
 0x157   : > { %2186 = vmatmul.msk.f32.gmra.mxu3 %vm336_vm0, %v679_v10 }
 0x15a   : > { %v646_v15 = vpop.f32.mrf.mxu2 }
 0x15b   : > { %v647_v16 = vadd.f32 %v2873_v30, %v646_v15 }
 0x15d   : > { %v680_v17 = vmul.f32 %v2920_v12, %v647_v16 }
 0x15f   : > { %2187 = vmatmul.msk.f32.gmra.mxu3 %vm336_vm0, %v680_v17 }
 0x162   : > { %v649_v20 = vpop.f32.mrf.mxu2 }
 0x163   : > { %v650_v21 = vadd.f32 %v2873_v30, %v649_v20 }
 0x165   : > { %v681_v24 = vmul.f32 %v2930_v22, %v650_v21 }
 0x167   : > { %2188 = vmatmul.msk.f32.gmra.mxu3 %vm336_vm0, %v681_v24 }
 0x16a   : > { %v652_v29 = vpop.f32.mrf.mxu2 }
 0x16b   : > { %v653_v62 = vadd.f32 %v2873_v30, %v652_v29 }
 0x16d   : > { %v682_v31 = vmul.f32 %v2940_v28, %v653_v62 }
 0x16f   : > { %2189 = vmatmul.msk.f32.gmra.mxu3 %vm336_vm0, %v682_v31 }
 0x172   : > { %v655_v34 = vpop.f32.mrf.mxu2 }
 0x173   : > { %v656_v35 = vadd.f32 %v2873_v30, %v655_v34 }
 0x175   : > { %v683_v2 = vmul.f32 %v2947_v36, %v656_v35 }
 0x177   : > { %2190 = vmatmul.msk.f32.gmra.mxu3 %vm336_vm0, %v683_v2 }
 0x17a   : > { %v658_v40 = vpop.f32.mrf.mxu2 }
 0x17b   : > { %v659_v7 = vadd.f32 %v2873_v30, %v658_v40 }
 0x17d   : > { %v684_v42 = vmul.f32 %v2957_v41, %v659_v7 }
 0x17f   : > { %2191 = vmatmul.msk.f32.gmra.mxu3 %vm336_vm0, %v684_v42 }
 0x182   : > { %v661_v46 = vpop.f32.mrf.mxu2 }
 0x183   : > { %v662_v13 = vadd.f32 %v2873_v30, %v661_v46 }
 0x185   : > { %v685_v48 = vmul.f32 %v2967_v47, %v662_v13 }
 0x187   : > { %2192 = vmatmul.msk.f32.gmra.mxu3 %vm336_vm0, %v685_v48 }
 0x18a   : > { %v664_v51 = vpop.f32.mrf.mxu2 }
 0x18b   : > { %v665_v52 = vadd.f32 %v2873_v30, %v664_v51 }
 0x18d   : > { %v686_v18 = vmul.f32 %v2974_v53, %v665_v52 }
 0x18f   : > { %2193 = vmatmul.msk.f32.gmra.mxu3 %vm336_vm0, %v686_v18 }
 0x192   : > { %v667_v57 = vpop.f32.mrf.mxu2 }
 0x193   : > { %v668_v58 = vadd.f32 %v2873_v30, %v667_v57 }
 0x195   : > { %v687_v23 = vmul.f32 %v2981_v59, %v668_v58 }
 0x197   : > { %2194 = vmatmul.msk.f32.gmra.mxu3 %vm336_vm0, %v687_v23 }
 0x19a   : > { %v670_v60 = vpop.f32.mrf.mxu2 }
 0x19b   : > { %v671_v61 = vadd.f32 %v2873_v30, %v670_v60 }
 0x19d   : > { %v688_v1 = vmul.f32 %v2986_v0, %v671_v61 }
 0x19f   : > { %2195 = vmatmul.msk.f32.gmra.mxu3 %vm336_vm0, %v688_v1 }
 0x1aa   : > { %v767_v27 = vpop.f32.mrf.mxu3 }
 0x1ab   : > { %v768_v3 = vadd.f32 %v2990_v26, %v767_v27 }
 0x1ad   : > { %2426 = vtanh.f32 %v768_v3  ;;  %v3024_v3 = vld [vmem:[#allocation2 + $0x3] ss:$0 sm:$0xff] }
 0x1b2   : > { %v770_v4 = vpop.f32.mrf.mxu3 }
 0x1b3   : > { %v2427_v5 = vpop.eup %2426  ;;  %v771_v8 = vadd.f32 %v2990_v26, %v770_v4 }
 0x1b4   : > { %2196 = vmatmul.msk.f32.vlgmr.msrb.gmra.mxu0 %vm336_vm0, %v2427_v5 }
 0x1b5   : > { %2428 = vtanh.f32 %v771_v8 }
 0x1ba   : > { %v773_v30 = vpop.f32.mrf.mxu3 }
 0x1bb   : > { %v2429_v9 = vpop.eup %2428  ;;  %v774_v10 = vadd.f32 %v2990_v26, %v773_v30 }
 0x1bc   : > { %2197 = vmatmul.msk.f32.gmra.mxu0 %vm336_vm0, %v2429_v9 }
 0x1bd   : > { %2430 = vtanh.f32 %v774_v10 }
 0x1c2   : > { %v776_v11 = vpop.f32.mrf.mxu3 }
 0x1c3   : > { %v2431_v14 = vpop.eup %2430  ;;  %v777_v15 = vadd.f32 %v2990_v26, %v776_v11 }
 0x1c4   : > { %2198 = vmatmul.msk.f32.gmra.mxu0 %vm336_vm0, %v2431_v14 }
 0x1c5   : > { %2432 = vtanh.f32 %v777_v15 }
 0x1ca   : > { %v779_v16 = vpop.f32.mrf.mxu3 }
 0x1cb   : > { %v2433_v17 = vpop.eup %2432  ;;  %v780_v19 = vadd.f32 %v2990_v26, %v779_v16 }
 0x1cc   : > { %2199 = vmatmul.msk.f32.gmra.mxu0 %vm336_vm0, %v2433_v17 }
 0x1cd   : > { %2434 = vtanh.f32 %v780_v19 }
 0x1d2   : > { %v782_v20 = vpop.f32.mrf.mxu3 }
 0x1d3   : > { %v2435_v21 = vpop.eup %2434  ;;  %v783_v24 = vadd.f32 %v2990_v26, %v782_v20 }
 0x1d4   : > { %2200 = vmatmul.msk.f32.gmra.mxu0 %vm336_vm0, %v2435_v21 }
 0x1d5   : > { %2436 = vtanh.f32 %v783_v24 }
 0x1da   : > { %v785_v56 = vpop.f32.mrf.mxu3 }
 0x1db   : > { %v2437_v25 = vpop.eup %2436  ;;  %v786_v29 = vadd.f32 %v2990_v26, %v785_v56 }
 0x1dc   : > { %2201 = vmatmul.msk.f32.gmra.mxu0 %vm336_vm0, %v2437_v25 }
 0x1dd   : > { %2438 = vtanh.f32 %v786_v29 }
 0x1e2   : > { %v788_v62 = vpop.f32.mrf.mxu3 }
 0x1e3   : > { %v2439_v31 = vpop.eup %2438  ;;  %v789_v33 = vadd.f32 %v2990_v26, %v788_v62 }
 0x1e4   : > { %2202 = vmatmul.msk.f32.gmra.mxu0 %vm336_vm0, %v2439_v31 }
 0x1e5   : > { %2440 = vtanh.f32 %v789_v33 }
 0x1ea   : > { %v791_v34 = vpop.f32.mrf.mxu3 }
 0x1eb   : > { %v2441_v35 = vpop.eup %2440  ;;  %v792_v2 = vadd.f32 %v2990_v26, %v791_v34 }
 0x1ec   : > { %2203 = vmatmul.msk.f32.gmra.mxu0 %vm336_vm0, %v2441_v35 }
 0x1ed   : > { %2442 = vtanh.f32 %v792_v2 }
 0x1f2   : > { %v794_v37 = vpop.f32.mrf.mxu3 }
 0x1f3   : > { %v2443_v39 = vpop.eup %2442  ;;  %v795_v40 = vadd.f32 %v2990_v26, %v794_v37 }
 0x1f4   : > { %2204 = vmatmul.msk.f32.gmra.mxu0 %vm336_vm0, %v2443_v39  ;;  %v2215_v39 = vld [vmem:[%s3511_s1 + $0x98] sm:$0xff] }
 0x1f5   : > { %2444 = vtanh.f32 %v795_v40  ;;  %1130 = vmatpush.msrb.mxu1 %v2215_v39  ;;  %v2216_v39 = vld [vmem:[%s3511_s1 + $0xa0] sm:$0xff] }
 0x1fa   : > { %v797_v7 = vpop.f32.mrf.mxu3 }
 0x1fb   : > { %v2445_v42 = vpop.eup %2444  ;;  %v798_v43 = vadd.f32 %v2990_v26, %v797_v7 }
 0x1fc   : > { %2205 = vmatmul.msk.f32.gmra.mxu0 %vm336_vm0, %v2445_v42 }
 0x1fd   : > { %2446 = vtanh.f32 %v798_v43 }
 0x202   : > { %v800_v45 = vpop.f32.mrf.mxu3 }
 0x203   : > { %v2447_v46 = vpop.eup %2446  ;;  %v801_v13 = vadd.f32 %v2990_v26, %v800_v45 }
 0x204   : > { %2206 = vmatmul.msk.f32.gmra.mxu0 %vm336_vm0, %v2447_v46  ;;  %v2214_v46 = vld [vmem:[%s3511_s1 + $0x90] sm:$0xff] }
 0x205   : > { %2448 = vtanh.f32 %v801_v13  ;;  %v2213_v13 = vld [vmem:[%s3511_s1 + $0x88] sm:$0xff]  ;;  %1131 = vmatpush.msrb.mxu1 %v2214_v46 }
 0x207   : > { %1132 = vmatpush.msrb.mxu1 %v2213_v13  ;;  %v3123_v13 = vld [vmem:[#allocation2 + $0x4] ss:$0 sm:$0xff] }
 0x20a   : > { %v803_v48 = vpop.f32.mrf.mxu3 }
 0x20b   : > { %v2449_v49 = vpop.eup %2448  ;;  %v804_v51 = vadd.f32 %v2990_v26, %v803_v48 }
 0x20c   : > { %2207 = vmatmul.msk.f32.gmra.mxu0 %vm336_vm0, %v2449_v49 }
 0x20d   : > { %2450 = vtanh.f32 %v804_v51 }
 0x212   : > { %v806_v52 = vpop.f32.mrf.mxu3 }
 0x213   : > { %v2451_v18 = vpop.eup %2450  ;;  %v807_v54 = vadd.f32 %v2990_v26, %v806_v52 }
 0x214   : > { %2208 = vmatmul.msk.f32.gmra.mxu0 %vm336_vm0, %v2451_v18 }
 0x215   : > { %2452 = vtanh.f32 %v807_v54 }
 0x21a   : > { %v809_v57 = vpop.f32.mrf.mxu3 }
 0x21b   : > { %v2453_v58 = vpop.eup %2452  ;;  %v810_v23 = vadd.f32 %v2990_v26, %v809_v57 }
 0x21c   : > { %2209 = vmatmul.msk.f32.gmra.mxu0 %vm336_vm0, %v2453_v58 }
 0x21d   : > { %2454 = vtanh.f32 %v810_v23 }
 0x222   : > { %v812_v60 = vpop.f32.mrf.mxu3 }
 0x223   : > { %v2455_v61 = vpop.eup %2454  ;;  %v813_v1 = vadd.f32 %v2990_v26, %v812_v60 }
 0x224   : > { %2210 = vmatmul.msk.f32.gmra.mxu0 %vm336_vm0, %v2455_v61 }
 0x225   : > { %2456 = vtanh.f32 %v813_v1  ;;  %v2212_v1 = vld [vmem:[%s3511_s1 + $0x80] sm:$0xff] }
 0x226   : > { %1133 = vmatpush.msrb.mxu1 %v2212_v1 }
 0x22b   : > { %v2457_v27 = vpop.eup %2456 }
 0x22c   : > { %2211 = vmatmul.msk.f32.gmra.mxu0 %vm336_vm0, %v2457_v27  ;;  %v2219_v27 = vld [vmem:[%s3511_s1 + $0xb8] sm:$0xff] }
 0x22d   : > { %1260 = vmatpush.msra.mxu2 %v2219_v27 }
 0x231   : > { %v897_v4 = vpop.f32.mrf.mxu0 }
 0x232   : > { %v898_v5 = vadd.f32 %v3024_v3, %v897_v4 }
 0x234   : > { %961 = vrot.lane.b32.xlu0 %v898_v5, %s2632_s22 }
 0x239   : > { %v900_v8 = vpop.f32.mrf.mxu0 }
 0x23a   : > { %v901_v30 = vadd.f32 %v3024_v3, %v900_v8 }
 0x23c   : > { %963 = vrot.lane.b32.xlu0 %v901_v30, %s2632_s22 }
 0x241   : > { %v903_v26 = vpop.f32.mrf.mxu0 }
 0x242   : > { %v904_v9 = vadd.f32 %v3024_v3, %v903_v26 }
 0x244   : > { %965 = vrot.lane.b32.xlu1 %v904_v9, %s2632_s22 }
 0x249   : > { %v906_v10 = vpop.f32.mrf.mxu0 }
 0x24a   : > { %v907_v11 = vadd.f32 %v3024_v3, %v906_v10 }
 0x24c   : > { %967 = vrot.lane.b32.xlu1 %v907_v11, %s2632_s22  ;;  %v2218_v11 = vld [vmem:[%s3511_s1 + $0xb0] sm:$0xff] }
 0x24d   : > { %1261 = vmatpush.msra.mxu2 %v2218_v11 }
 0x251   : > { %v909_v14 = vpop.f32.mrf.mxu0 }
 0x252   : > { %v910_v15 = vadd.f32 %v3024_v3, %v909_v14 }
 0x254   : > { %969 = vrot.lane.b32.xlu2 %v910_v15, %s2632_s22 }
 0x259   : > { %v912_v16 = vpop.f32.mrf.mxu0 }
 0x25a   : > { %v913_v17 = vadd.f32 %v3024_v3, %v912_v16 }
 0x25c   : > { %971 = vrot.lane.b32.xlu2 %v913_v17, %s2632_s22 }
 0x261   : > { %v915_v19 = vpop.f32.mrf.mxu0 }
 0x262   : > { %v916_v20 = vadd.f32 %v3024_v3, %v915_v19 }
 0x264   : > { %973 = vrot.lane.b32.xlu1 %v916_v20, %s2632_s22 }
 0x269   : > { %v918_v21 = vpop.f32.mrf.mxu0 }
 0x26a   : > { %v919_v29 = vadd.f32 %v3024_v3, %v918_v21 }
 0x271   : > { %v921_v24 = vpop.f32.mrf.mxu0 }
 0x272   : > { %v922_v35 = vadd.f32 %v3024_v3, %v921_v24 }
 0x279   : > { %v924_v62 = vpop.f32.mrf.mxu0 }
 0x27a   : > { %v925_v42 = vadd.f32 %v3024_v3, %v924_v62 }
 0x281   : > { %v927_v37 = vpop.f32.mrf.mxu0 }
 0x282   : > { %v928_v51 = vadd.f32 %v3024_v3, %v927_v37 }
 0x289   : > { %v930_v48 = vpop.f32.mrf.mxu0 }
 0x28a   : > { %v931_v18 = vadd.f32 %v3024_v3, %v930_v48 }
 0x291   : > { %v933_v54 = vpop.f32.mrf.mxu0 }
 0x292   : > { %v934_v57 = vadd.f32 %v3024_v3, %v933_v54 }
 0x299   : > { %v936_v60 = vpop.f32.mrf.mxu0 }
 0x29a   : > { %v937_v61 = vadd.f32 %v3024_v3, %v936_v60 }
 0x2a1   : > { %v939_v5 = vpop.f32.mrf.mxu0 }
 0x2a2   : > { %v940_v17 = vadd.f32 %v3024_v3, %v939_v5 }
 0x2a6   : > { %v962_v56 = vpop.permute.xlu0 %961 }
 0x2a7   : > { %v1009_v25 = vmul.f32 %v2876_v32, %v962_v56  ;;  %v2217_v56 = vld [vmem:[%s3511_s1 + $0xa8] sm:$0xff] }
 0x2a8   : > { %1262 = vmatpush.msra.mxu2 %v2217_v56 }
 0x2a9   : > { %1054 = vrot.lane.b32.xlu0 %v1009_v25, %s2633_s25  ;;  %v942_v26 = vpop.f32.mrf.mxu0 }
 0x2aa   : > { %v943_v10 = vadd.f32 %v3024_v3, %v942_v26  ;;  %1263 = vmatpush.msra.mxu2 %v2216_v39 }
 0x2ae   : > { %v964_v31 = vpop.permute.xlu0 %963  ;;  %v970_v40 = vpop.permute.xlu2 %969 }
 0x2af   : > { %v1010_v33 = vmul.f32 %v2882_v38, %v964_v31  ;;  %v1013_v45 = vmul.f32 %v2900_v55, %v970_v40 }
 0x2b1   : > { %975 = vrot.lane.b32.xlu0 %v919_v29, %s2632_s22  ;;  %1056 = vrot.lane.b32.xlu2 %v1010_v33, %s2633_s25 }
 0x2b6   : > { %v966_v34 = vpop.permute.xlu1 %965  ;;  %v972_v49 = vpop.permute.xlu2 %971 }
 0x2b7   : > { %v1011_v2 = vmul.f32 %v2888_v44, %v966_v34  ;;  %v1014_v52 = vmul.f32 %v2906_v63, %v972_v49 }
 0x2b9   : > { %1058 = vrot.lane.b32.xlu1 %v1011_v2, %s2633_s25  ;;  %977 = vrot.lane.b32.xlu2 %v922_v35, %s2632_s22 }
 0x2be   : > { %v968_v7 = vpop.permute.xlu1 %967 }
 0x2bf   : > { %v1012_v43 = vmul.f32 %v2894_v50, %v968_v7 }
 0x2c1   : > { %979 = vrot.lane.b32.xlu1 %v925_v42, %s2632_s22  ;;  %1060 = vrot.lane.b32.xlu0 %v1012_v43, %s2633_s25 }
 0x2c2   : > { %1062 = vrot.lane.b32.xlu2 %v1013_v45, %s2633_s25 }
 0x2c9   : > { %1064 = vrot.lane.b32.xlu1 %v1014_v52, %s2633_s25  ;;  %981 = vrot.lane.b32.xlu0 %v928_v51, %s2632_s22 }
 0x2ca   : > { %983 = vrot.lane.b32.xlu2 %v931_v18, %s2632_s22 }
 0x2d1   : > { %985 = vrot.lane.b32.xlu1 %v934_v57, %s2632_s22 }
 0x2d6   : > { %v974_v58 = vpop.permute.xlu1 %973 }
 0x2d7   : > { %v1015_v23 = vmul.f32 %v2912_v6, %v974_v58 }
 0x2d9   : > { %1066 = vrot.lane.b32.xlu0 %v1015_v23, %s2633_s25 }
 0x2e1   : > { %987 = vrot.lane.b32.xlu0 %v937_v61, %s2632_s22 }
 0x30b   : > { %v1057_v4 = vpop.permute.xlu2 %1056 }
 0x313   : > { %v978_v8 = vpop.permute.xlu2 %977 }
 0x314   : > { %v1017_v30 = vmul.f32 %v2930_v22, %v978_v8 }
 0x316   : > { %1070 = vrot.lane.b32.xlu1 %v1017_v30, %s2633_s25 }
 0x31b   : > { %v1055_v9 = vpop.permute.xlu0 %1054 }
 0x31c   : > { %2220 = vmatmul.msk.f32.vlgmr.msrb.gmra.mxu1 %vm336_vm0, %v1055_v9  ;;  %v1063_v19 = vpop.permute.xlu2 %1062 }
 0x31e   : > { %991 = vrot.lane.b32.xlu1 %v943_v10, %s2632_s22 }
 0x323   : > { %v976_v14 = vpop.permute.xlu0 %975 }
 0x324   : > { %v1016_v15 = vmul.f32 %v2920_v12, %v976_v14  ;;  %2221 = vmatmul.msk.f32.gmra.mxu1 %vm336_vm0, %v1057_v4  ;;  %v984_v25 = vpop.permute.xlu2 %983 }
 0x325   : > { %v1020_v62 = vmul.f32 %v2957_v41, %v984_v25 }
 0x326   : > { %1068 = vrot.lane.b32.xlu2 %v1016_v15, %s2633_s25 }
 0x32b   : > { %v1059_v16 = vpop.permute.xlu1 %1058 }
 0x32c   : > { %2222 = vmatmul.msk.f32.gmra.mxu1 %vm336_vm0, %v1059_v16 }
 0x32e   : > { %989 = vrot.lane.b32.xlu2 %v940_v17, %s2632_s22 }
 0x333   : > { %v980_v20 = vpop.permute.xlu1 %979  ;;  %v1061_v21 = vpop.permute.xlu0 %1060 }
 0x334   : > { %v1018_v24 = vmul.f32 %v2940_v28, %v980_v20  ;;  %2223 = vmatmul.msk.f32.gmra.mxu1 %vm336_vm0, %v1061_v21 }
 0x336   : > { %1072 = vrot.lane.b32.xlu0 %v1018_v24, %s2633_s25 }
 0x33b   : > { %v1065_v3 = vpop.permute.xlu1 %1064  ;;  %v982_v29 = vpop.permute.xlu0 %981 }
 0x33c   : > { %v1019_v31 = vmul.f32 %v2947_v36, %v982_v29  ;;  %2224 = vmatmul.msk.f32.gmra.mxu1 %vm336_vm0, %v1063_v19 }
 0x33e   : > { %1076 = vrot.lane.b32.xlu0 %v1020_v62, %s2633_s25  ;;  %1074 = vrot.lane.b32.xlu2 %v1019_v31, %s2633_s25  ;;  %v3150_v31 = vld [vmem:[#allocation2 + $0x5] ss:$0 sm:$0xff] }
 0x343   : > { %v986_v33 = vpop.permute.xlu1 %985 }
 0x344   : > { %v1021_v34 = vmul.f32 %v2967_v47, %v986_v33  ;;  %2225 = vmatmul.msk.f32.gmra.mxu1 %vm336_vm0, %v1065_v3 }
 0x346   : > { %1078 = vrot.lane.b32.xlu1 %v1021_v34, %s2633_s25 }
 0x34b   : > { %v1067_v35 = vpop.permute.xlu0 %1066 }
 0x34c   : > { %2226 = vmatmul.msk.f32.gmra.mxu1 %vm336_vm0, %v1067_v35 }
 0x353   : > { %v988_v2 = vpop.permute.xlu0 %987 }
 0x354   : > { %v1022_v37 = vmul.f32 %v2974_v53, %v988_v2 }
 0x356   : > { %1080 = vrot.lane.b32.xlu2 %v1022_v37, %s2633_s25 }
 0x380   : > { %v1069_v40 = vpop.permute.xlu2 %1068 }
 0x381   : > { %2227 = vmatmul.msk.f32.gmra.mxu1 %vm336_vm0, %v1069_v40 }
 0x388   : > { %v1071_v7 = vpop.permute.xlu1 %1070  ;;  %v990_v42 = vpop.permute.xlu2 %989 }
 0x389   : > { %v1023_v43 = vmul.f32 %v2981_v59, %v990_v42  ;;  %2228 = vmatmul.msk.f32.gmra.mxu1 %vm336_vm0, %v1071_v7 }
 0x38b   : > { %1082 = vrot.lane.b32.xlu0 %v1023_v43, %s2633_s25 }
 0x390   : > { %v992_v45 = vpop.permute.xlu1 %991 }
 0x391   : > { %v1024_v46 = vmul.f32 %v2986_v0, %v992_v45 }
 0x393   : > { %1084 = vrot.lane.b32.xlu1 %v1024_v46, %s2633_s25 }
 0x398   : > { %v1075_v60 = vpop.permute.xlu2 %1074 }
 0x399   : > { %v1135_v48 = vpop.f32.mrf.mxu1 }
 0x39a   : > { %v1136_v49 = vadd.f32 %v3123_v13, %v1135_v48 }
 0x39c   : > { %2458 = vtanh.f32 %v1136_v49 }
 0x3a1   : > { %v1138_v51 = vpop.f32.mrf.mxu1 }
 0x3a2   : > { %v2459_v52 = vpop.eup %2458  ;;  %v1139_v18 = vadd.f32 %v3123_v13, %v1138_v51  ;;  %v2255_v51 = vld [vmem:[%s3511_s1 + $0xd8] sm:$0xff] }
 0x3a3   : > { %2236 = vmatmul.msk.f32.vlgmr.msra.gmra.mxu2 %vm336_vm0, %v2459_v52  ;;  %1498 = vmatpush.msra.mxu3 %v2255_v51 }
 0x3a4   : > { %2460 = vtanh.f32 %v1139_v18 }
 0x3a8   : > { %v1073_v54 = vpop.permute.xlu0 %1072 }
 0x3a9   : > { %v1141_v57 = vpop.f32.mrf.mxu1  ;;  %2229 = vmatmul.msk.f32.gmra.mxu1 %vm336_vm0, %v1073_v54 }
 0x3aa   : > { %v2461_v58 = vpop.eup %2460  ;;  %v1142_v23 = vadd.f32 %v3123_v13, %v1141_v57 }
 0x3ab   : > { %2237 = vmatmul.msk.f32.gmra.mxu2 %vm336_vm0, %v2461_v58 }
 0x3ac   : > { %2462 = vtanh.f32 %v1142_v23 }
 0x3b0   : > { %v1077_v4 = vpop.permute.xlu0 %1076  ;;  %v1081_v14 = vpop.permute.xlu2 %1080 }
 0x3b1   : > { %v1144_v61 = vpop.f32.mrf.mxu1  ;;  %2230 = vmatmul.msk.f32.gmra.mxu1 %vm336_vm0, %v1075_v60 }
 0x3b2   : > { %v2463_v1 = vpop.eup %2462  ;;  %v1145_v27 = vadd.f32 %v3123_v13, %v1144_v61 }
 0x3b3   : > { %2238 = vmatmul.msk.f32.gmra.mxu2 %vm336_vm0, %v2463_v1 }
 0x3b4   : > { %2464 = vtanh.f32 %v1145_v27 }
 0x3b8   : > { %v1079_v26 = vpop.permute.xlu1 %1078 }
 0x3b9   : > { %v1147_v5 = vpop.f32.mrf.mxu1  ;;  %2231 = vmatmul.msk.f32.gmra.mxu1 %vm336_vm0, %v1077_v4 }
 0x3ba   : > { %v2465_v8 = vpop.eup %2464  ;;  %v1148_v30 = vadd.f32 %v3123_v13, %v1147_v5 }
 0x3bb   : > { %2239 = vmatmul.msk.f32.gmra.mxu2 %vm336_vm0, %v2465_v8 }
 0x3bc   : > { %2466 = vtanh.f32 %v1148_v30 }
 0x3c1   : > { %v1150_v9 = vpop.f32.mrf.mxu1  ;;  %2232 = vmatmul.msk.f32.gmra.mxu1 %vm336_vm0, %v1079_v26 }
 0x3c2   : > { %v2467_v10 = vpop.eup %2466  ;;  %v1151_v11 = vadd.f32 %v3123_v13, %v1150_v9  ;;  %v2254_v9 = vld [vmem:[%s3511_s1 + $0xd0] sm:$0xff] }
 0x3c3   : > { %2240 = vmatmul.msk.f32.gmra.mxu2 %vm336_vm0, %v2467_v10  ;;  %1499 = vmatpush.msra.mxu3 %v2254_v9 }
 0x3c4   : > { %2468 = vtanh.f32 %v1151_v11 }
 0x3c9   : > { %v1153_v15 = vpop.f32.mrf.mxu1  ;;  %2233 = vmatmul.msk.f32.gmra.mxu1 %vm336_vm0, %v1081_v14  ;;  %v2253_v14 = vld [vmem:[%s3511_s1 + $0xc8] sm:$0xff] }
 0x3ca   : > { %v2469_v16 = vpop.eup %2468  ;;  %v1154_v17 = vadd.f32 %v3123_v13, %v1153_v15  ;;  %1500 = vmatpush.msra.mxu3 %v2253_v14 }
 0x3cb   : > { %2241 = vmatmul.msk.f32.gmra.mxu2 %vm336_vm0, %v2469_v16 }
 0x3cc   : > { %2470 = vtanh.f32 %v1154_v17 }
 0x3d2   : > { %v2471_v19 = vpop.eup %2470 }
 0x3d3   : > { %2242 = vmatmul.msk.f32.gmra.mxu2 %vm336_vm0, %v2471_v19 }
 0x3fd   : > { %v1083_v20 = vpop.permute.xlu0 %1082 }
 0x3fe   : > { %v1156_v21 = vpop.f32.mrf.mxu1  ;;  %2234 = vmatmul.msk.f32.gmra.mxu1 %vm336_vm0, %v1083_v20 }
 0x3ff   : > { %v1157_v24 = vadd.f32 %v3123_v13, %v1156_v21 }
 0x401   : > { %2472 = vtanh.f32 %v1157_v24 }
 0x405   : > { %v1085_v56 = vpop.permute.xlu1 %1084 }
 0x406   : > { %v1159_v25 = vpop.f32.mrf.mxu1  ;;  %2235 = vmatmul.msk.f32.gmra.mxu1 %vm336_vm0, %v1085_v56 }
 0x407   : > { %v2473_v3 = vpop.eup %2472  ;;  %v1160_v29 = vadd.f32 %v3123_v13, %v1159_v25 }
 0x408   : > { %2243 = vmatmul.msk.f32.gmra.mxu2 %vm336_vm0, %v2473_v3 }
 0x409   : > { %2474 = vtanh.f32 %v1160_v29 }
 0x40f   : > { %v2475_v62 = vpop.eup %2474 }
 0x410   : > { %2244 = vmatmul.msk.f32.gmra.mxu2 %vm336_vm0, %v2475_v62 }
 0x426   : > { %v1162_v33 = vpop.f32.mrf.mxu1  ;;  %v1265_v34 = vpop.f32.mrf.mxu2 }
 0x427   : > { %v1163_v35 = vadd.f32 %v3123_v13, %v1162_v33  ;;  %v1266_v2 = vadd.f32 %v3150_v31, %v1265_v34 }
 0x429   : > { %2476 = vtanh.f32 %v1163_v35  ;;  %1329 = vrot.lane.b32.xlu2 %v1266_v2, %s2634_s20 }
 0x42e   : > { %v1165_v37 = vpop.f32.mrf.mxu1  ;;  %v1268_v39 = vpop.f32.mrf.mxu2 }
 0x42f   : > { %v2477_v40 = vpop.eup %2476  ;;  %v1166_v7 = vadd.f32 %v3123_v13, %v1165_v37  ;;  %v1269_v42 = vadd.f32 %v3150_v31, %v1268_v39 }
 0x430   : > { %2245 = vmatmul.msk.f32.gmra.mxu2 %vm336_vm0, %v2477_v40 }
 0x431   : > { %2478 = vtanh.f32 %v1166_v7  ;;  %1331 = vrot.lane.b32.xlu0 %v1269_v42, %s2634_s20 }
 0x436   : > { %v1168_v43 = vpop.f32.mrf.mxu1  ;;  %v1271_v45 = vpop.f32.mrf.mxu2 }
 0x437   : > { %v2479_v46 = vpop.eup %2478  ;;  %v1169_v48 = vadd.f32 %v3123_v13, %v1168_v43  ;;  %v1272_v49 = vadd.f32 %v3150_v31, %v1271_v45 }
 0x438   : > { %2246 = vmatmul.msk.f32.gmra.mxu2 %vm336_vm0, %v2479_v46 }
 0x439   : > { %2480 = vtanh.f32 %v1169_v48  ;;  %1333 = vrot.lane.b32.xlu1 %v1272_v49, %s2634_s20 }
 0x43e   : > { %v1171_v52 = vpop.f32.mrf.mxu1  ;;  %v1274_v18 = vpop.f32.mrf.mxu2 }
 0x43f   : > { %v2481_v54 = vpop.eup %2480  ;;  %v1172_v57 = vadd.f32 %v3123_v13, %v1171_v52  ;;  %v1275_v58 = vadd.f32 %v3150_v31, %v1274_v18  ;;  %v2259_v18 = vld [vmem:[%s3511_s1 + $0xf8] sm:$0xff] }
 0x440   : > { %2247 = vmatmul.msk.f32.gmra.mxu2 %vm336_vm0, %v2481_v54  ;;  %1628 = vmatpush.msra.mxu0 %v2259_v18 }
 0x441   : > { %2482 = vtanh.f32 %v1172_v57  ;;  %1335 = vrot.lane.b32.xlu2 %v1275_v58, %s2634_s20 }
 0x446   : > { %v1174_v23 = vpop.f32.mrf.mxu1  ;;  %v1277_v60 = vpop.f32.mrf.mxu2 }
 0x447   : > { %v2483_v61 = vpop.eup %2482  ;;  %v1175_v1 = vadd.f32 %v3123_v13, %v1174_v23  ;;  %v1278_v27 = vadd.f32 %v3150_v31, %v1277_v60 }
 0x448   : > { %2248 = vmatmul.msk.f32.gmra.mxu2 %vm336_vm0, %v2483_v61 }
 0x449   : > { %2484 = vtanh.f32 %v1175_v1  ;;  %1337 = vrot.lane.b32.xlu0 %v1278_v27, %s2634_s20  ;;  %v2258_v27 = vld [vmem:[%s3511_s1 + $0xf0] sm:$0xff] }
 0x44a   : > { %1629 = vmatpush.msra.mxu0 %v2258_v27 }
 0x44e   : > { %v1280_v4 = vpop.f32.mrf.mxu2 }
 0x44f   : > { %v2485_v5 = vpop.eup %2484  ;;  %v1281_v8 = vadd.f32 %v3150_v31, %v1280_v4 }
 0x450   : > { %2249 = vmatmul.msk.f32.gmra.mxu2 %vm336_vm0, %v2485_v5 }
 0x451   : > { %1339 = vrot.lane.b32.xlu1 %v1281_v8, %s2634_s20  ;;  %v2257_v8 = vld [vmem:[%s3511_s1 + $0xe8] sm:$0xff] }
 0x452   : > { %1630 = vmatpush.msra.mxu0 %v2257_v8 }
 0x456   : > { %v1283_v30 = vpop.f32.mrf.mxu2 }
 0x457   : > { %v1284_v26 = vadd.f32 %v3150_v31, %v1283_v30 }
 0x459   : > { %1341 = vrot.lane.b32.xlu0 %v1284_v26, %s2634_s20 }
 0x47b   : > { %v1177_v10 = vpop.f32.mrf.mxu1 }
 0x47c   : > { %v1178_v11 = vadd.f32 %v3123_v13, %v1177_v10 }
 0x47e   : > { %2486 = vtanh.f32 %v1178_v11 }
 0x483   : > { %v1330_v15 = vpop.permute.xlu2 %1329  ;;  %v1180_v16 = vpop.f32.mrf.mxu1 }
 0x484   : > { %v2487_v17 = vpop.eup %2486  ;;  %v1377_v19 = vmul.f32 %v2876_v32, %v1330_v15  ;;  %v1181_v20 = vadd.f32 %v3123_v13, %v1180_v16  ;;  %v2252_v13 = vld [vmem:[%s3511_s1 + $0xc0] sm:$0xff] }
 0x485   : > { %2250 = vmatmul.msk.f32.gmra.mxu2 %vm336_vm0, %v2487_v17  ;;  %1501 = vmatpush.msra.mxu3 %v2252_v13  ;;  %v2256_v16 = vld [vmem:[%s3511_s1 + $0xe0] sm:$0xff] }
 0x486   : > { %2488 = vtanh.f32 %v1181_v20  ;;  %1422 = vrot.lane.b32.xlu2 %v1377_v19, %s2634_s20  ;;  %1631 = vmatpush.msra.mxu0 %v2256_v16 }
 0x48b   : > { %v1286_v21 = vpop.f32.mrf.mxu2 }
 0x48c   : > { %v2489_v24 = vpop.eup %2488  ;;  %v1287_v56 = vadd.f32 %v3150_v31, %v1286_v21 }
 0x48d   : > { %2251 = vmatmul.msk.f32.gmra.mxu2 %vm336_vm0, %v2489_v24 }
 0x48e   : > { %1343 = vrot.lane.b32.xlu2 %v1287_v56, %s2634_s20 }
 0x493   : > { %v1289_v33 = vpop.f32.mrf.mxu2 }
 0x494   : > { %v1290_v35 = vadd.f32 %v3150_v31, %v1289_v33 }
 0x49b   : > { %v1336_v25 = vpop.permute.xlu2 %1335 }
 0x49c   : > { %v1380_v3 = vmul.f32 %v2894_v50, %v1336_v25 }
 0x49e   : > { %1428 = vrot.lane.b32.xlu2 %v1380_v3, %s2634_s20 }
 0x4a3   : > { %v1332_v29 = vpop.permute.xlu0 %1331 }
 0x4a4   : > { %v1378_v62 = vmul.f32 %v2882_v38, %v1332_v29 }
 0x4a6   : > { %1424 = vrot.lane.b32.xlu1 %v1378_v62, %s2634_s20 }
 0x4ab   : > { %v1334_v34 = vpop.permute.xlu1 %1333 }
 0x4ac   : > { %v1379_v2 = vmul.f32 %v2888_v44, %v1334_v34 }
 0x4ae   : > { %1426 = vrot.lane.b32.xlu0 %v1379_v2, %s2634_s20  ;;  %1345 = vrot.lane.b32.xlu1 %v1290_v35, %s2634_s20  ;;  %v3258_v35 = vld [vmem:[#allocation2 + $0x6] ss:$0 sm:$0xff] }
 0x4b3   : > { %v1292_v37 = vpop.f32.mrf.mxu2 }
 0x4b4   : > { %v1293_v39 = vadd.f32 %v3150_v31, %v1292_v37 }
 0x4b6   : > { %1347 = vrot.lane.b32.xlu0 %v1293_v39, %s2634_s20 }
 0x4bb   : > { %v1295_v40 = vpop.f32.mrf.mxu2  ;;  %v1338_v7 = vpop.permute.xlu0 %1337 }
 0x4bc   : > { %v1296_v42 = vadd.f32 %v3150_v31, %v1295_v40  ;;  %v1381_v43 = vmul.f32 %v2900_v55, %v1338_v7 }
 0x4be   : > { %1349 = vrot.lane.b32.xlu2 %v1296_v42, %s2634_s20  ;;  %1430 = vrot.lane.b32.xlu1 %v1381_v43, %s2634_s20 }
 0x4c3   : > { %v1340_v45 = vpop.permute.xlu1 %1339  ;;  %v1298_v46 = vpop.f32.mrf.mxu2 }
 0x4c4   : > { %v1382_v48 = vmul.f32 %v2906_v63, %v1340_v45  ;;  %v1299_v49 = vadd.f32 %v3150_v31, %v1298_v46 }
 0x4c6   : > { %1432 = vrot.lane.b32.xlu0 %v1382_v48, %s2634_s20  ;;  %1351 = vrot.lane.b32.xlu1 %v1299_v49, %s2634_s20 }
 0x4cb   : > { %v1301_v51 = vpop.f32.mrf.mxu2  ;;  %v1342_v52 = vpop.permute.xlu0 %1341 }
 0x4cc   : > { %v1302_v54 = vadd.f32 %v3150_v31, %v1301_v51  ;;  %v1383_v57 = vmul.f32 %v2912_v6, %v1342_v52 }
 0x4ce   : > { %1353 = vrot.lane.b32.xlu0 %v1302_v54, %s2634_s20  ;;  %1434 = vrot.lane.b32.xlu2 %v1383_v57, %s2634_s20 }
 0x4d3   : > { %v1304_v58 = vpop.f32.mrf.mxu2 }
 0x4d4   : > { %v1305_v23 = vadd.f32 %v3150_v31, %v1304_v58 }
 0x4d6   : > { %1355 = vrot.lane.b32.xlu2 %v1305_v23, %s2634_s20 }
 0x4e0   : > { %v1423_v60 = vpop.permute.xlu2 %1422 }
 0x4e1   : > { %2260 = vmatmul.msk.f32.vlgmr.msra.gmra.mxu3 %vm336_vm0, %v1423_v60 }
 0x4e8   : > { %v1344_v61 = vpop.permute.xlu2 %1343 }
 0x4e9   : > { %v1384_v1 = vmul.f32 %v2920_v12, %v1344_v61 }
 0x4eb   : > { %1436 = vrot.lane.b32.xlu1 %v1384_v1, %s2634_s20 }
 0x4f8   : > { %v1429_v30 = vpop.permute.xlu2 %1428 }
 0x508   : > { %v1307_v4 = vpop.f32.mrf.mxu2 }
 0x509   : > { %v1308_v5 = vadd.f32 %v3150_v31, %v1307_v4 }
 0x50b   : > { %1357 = vrot.lane.b32.xlu1 %v1308_v5, %s2634_s20 }
 0x510   : > { %v1310_v17 = vpop.f32.mrf.mxu2 }
 0x511   : > { %v1311_v21 = vadd.f32 %v3150_v31, %v1310_v17 }
 0x518   : > { %v1350_v26 = vpop.permute.xlu2 %1349  ;;  %v1425_v9 = vpop.permute.xlu1 %1424 }
 0x519   : > { %v1387_v10 = vmul.f32 %v2947_v36, %v1350_v26  ;;  %2261 = vmatmul.msk.f32.gmra.mxu3 %vm336_vm0, %v1425_v9 }
 0x51b   : > { %1442 = vrot.lane.b32.xlu1 %v1387_v10, %s2634_s20 }
 0x520   : > { %v1346_v11 = vpop.permute.xlu1 %1345  ;;  %v1427_v14 = vpop.permute.xlu0 %1426 }
 0x521   : > { %v1385_v15 = vmul.f32 %v2930_v22, %v1346_v11  ;;  %2262 = vmatmul.msk.f32.gmra.mxu3 %vm336_vm0, %v1427_v14 }
 0x523   : > { %1438 = vrot.lane.b32.xlu0 %v1385_v15, %s2634_s20 }
 0x528   : > { %v1435_v19 = vpop.permute.xlu2 %1434  ;;  %v1348_v20 = vpop.permute.xlu0 %1347 }
 0x529   : > { %v1386_v24 = vmul.f32 %v2940_v28, %v1348_v20  ;;  %2263 = vmatmul.msk.f32.gmra.mxu3 %vm336_vm0, %v1429_v30 }
 0x52b   : > { %1359 = vrot.lane.b32.xlu0 %v1311_v21, %s2634_s20  ;;  %1440 = vrot.lane.b32.xlu2 %v1386_v24, %s2634_s20 }
 0x530   : > { %v1431_v56 = vpop.permute.xlu1 %1430  ;;  %v1356_v25 = vpop.permute.xlu2 %1355 }
 0x531   : > { %v1390_v3 = vmul.f32 %v2974_v53, %v1356_v25  ;;  %2264 = vmatmul.msk.f32.gmra.mxu3 %vm336_vm0, %v1431_v56 }
 0x533   : > { %1448 = vrot.lane.b32.xlu1 %v1390_v3, %s2634_s20 }
 0x538   : > { %v1352_v13 = vpop.permute.xlu1 %1351  ;;  %v1433_v29 = vpop.permute.xlu0 %1432 }
 0x539   : > { %v1388_v31 = vmul.f32 %v2957_v41, %v1352_v13  ;;  %2265 = vmatmul.msk.f32.gmra.mxu3 %vm336_vm0, %v1433_v29 }
 0x53b   : > { %1444 = vrot.lane.b32.xlu2 %v1388_v31, %s2634_s20 }
 0x540   : > { %v1354_v62 = vpop.permute.xlu0 %1353 }
 0x541   : > { %v1389_v33 = vmul.f32 %v2967_v47, %v1354_v62  ;;  %2266 = vmatmul.msk.f32.gmra.mxu3 %vm336_vm0, %v1435_v19  ;;  %v3286_v19 = vld [vmem:[#allocation2 + $0x7] ss:$0 sm:$0xff] }
 0x543   : > { %1446 = vrot.lane.b32.xlu0 %v1389_v33, %s2634_s20 }
 0x55d   : > { %v1437_v34 = vpop.permute.xlu1 %1436 }
 0x55e   : > { %2267 = vmatmul.msk.f32.gmra.mxu3 %vm336_vm0, %v1437_v34 }
 0x564   : > { %v1503_v2 = vpop.f32.mrf.mxu3 }
 0x565   : > { %v1504_v37 = vadd.f32 %v3258_v35, %v1503_v2 }
 0x567   : > { %2490 = vtanh.f32 %v1504_v37 }
 0x56d   : > { %v2491_v39 = vpop.eup %2490 }
 0x56e   : > { %2276 = vmatmul.msk.f32.vlgmr.msra.gmra.mxu0 %vm336_vm0, %v2491_v39 }
 0x57d   : > { %v1358_v40 = vpop.permute.xlu1 %1357 }
 0x57e   : > { %v1391_v7 = vmul.f32 %v2981_v59, %v1358_v40 }
 0x580   : > { %1450 = vrot.lane.b32.xlu2 %v1391_v7, %s2634_s20 }
 0x585   : > { %v1441_v45 = vpop.permute.xlu2 %1440 }
 0x58d   : > { %v1443_v18 = vpop.permute.xlu1 %1442 }
 0x595   : > { %v1439_v42 = vpop.permute.xlu0 %1438  ;;  %v1445_v23 = vpop.permute.xlu2 %1444 }
 0x596   : > { %2268 = vmatmul.msk.f32.gmra.mxu3 %vm336_vm0, %v1439_v42 }
 0x59c   : > { %v1506_v43 = vpop.f32.mrf.mxu3 }
 0x59d   : > { %v1507_v46 = vadd.f32 %v3258_v35, %v1506_v43  ;;  %v1360_v48 = vpop.permute.xlu0 %1359 }
 0x59e   : > { %v1392_v49 = vmul.f32 %v2986_v0, %v1360_v48  ;;  %2269 = vmatmul.msk.f32.gmra.mxu3 %vm336_vm0, %v1441_v45 }
 0x59f   : > { %2492 = vtanh.f32 %v1507_v46 }
 0x5a0   : > { %1452 = vrot.lane.b32.xlu0 %v1392_v49, %s2634_s20 }
 0x5a4   : > { %v1509_v51 = vpop.f32.mrf.mxu3 }
 0x5a5   : > { %v2493_v52 = vpop.eup %2492  ;;  %v1510_v54 = vadd.f32 %v3258_v35, %v1509_v51  ;;  %v1449_v30 = vpop.permute.xlu1 %1448 }
 0x5a6   : > { %2270 = vmatmul.msk.f32.gmra.mxu3 %vm336_vm0, %v1443_v18  ;;  %2277 = vmatmul.msk.f32.gmra.mxu0 %vm336_vm0, %v2493_v52 }
 0x5a7   : > { %2494 = vtanh.f32 %v1510_v54 }
 0x5ac   : > { %v1512_v57 = vpop.f32.mrf.mxu3 }
 0x5ad   : > { %v2495_v58 = vpop.eup %2494  ;;  %v1513_v60 = vadd.f32 %v3258_v35, %v1512_v57 }
 0x5ae   : > { %2271 = vmatmul.msk.f32.gmra.mxu3 %vm336_vm0, %v1445_v23  ;;  %2278 = vmatmul.msk.f32.gmra.mxu0 %vm336_vm0, %v2495_v58 }
 0x5af   : > { %2496 = vtanh.f32 %v1513_v60 }
 0x5b4   : > { %v1515_v61 = vpop.f32.mrf.mxu3 }
 0x5b5   : > { %v2497_v1 = vpop.eup %2496  ;;  %v1516_v27 = vadd.f32 %v3258_v35, %v1515_v61  ;;  %v1447_v4 = vpop.permute.xlu0 %1446 }
 0x5b6   : > { %2272 = vmatmul.msk.f32.gmra.mxu3 %vm336_vm0, %v1447_v4  ;;  %2279 = vmatmul.msk.f32.gmra.mxu0 %vm336_vm0, %v2497_v1 }
 0x5b7   : > { %2498 = vtanh.f32 %v1516_v27 }
 0x5bc   : > { %v1518_v5 = vpop.f32.mrf.mxu3 }
 0x5bd   : > { %v2499_v8 = vpop.eup %2498  ;;  %v1519_v26 = vadd.f32 %v3258_v35, %v1518_v5 }
 0x5be   : > { %2273 = vmatmul.msk.f32.gmra.mxu3 %vm336_vm0, %v1449_v30  ;;  %2280 = vmatmul.msk.f32.gmra.mxu0 %vm336_vm0, %v2499_v8 }
 0x5bf   : > { %2500 = vtanh.f32 %v1519_v26 }
 0x5c4   : > { %v1521_v9 = vpop.f32.mrf.mxu3 }
 0x5c5   : > { %v2501_v10 = vpop.eup %2500  ;;  %v1522_v11 = vadd.f32 %v3258_v35, %v1521_v9 }
 0x5c6   : > { %2281 = vmatmul.msk.f32.gmra.mxu0 %vm336_vm0, %v2501_v10 }
 0x5c7   : > { %2502 = vtanh.f32 %v1522_v11 }
 0x5cd   : > { %v2503_v14 = vpop.eup %2502 }
 0x5ce   : > { %2282 = vmatmul.msk.f32.gmra.mxu0 %vm336_vm0, %v2503_v14 }
 0x5da   : > { %v1451_v15 = vpop.permute.xlu2 %1450 }
 0x5db   : > { %2274 = vmatmul.msk.f32.gmra.mxu3 %vm336_vm0, %v1451_v15 }
 0x5e1   : > { %v1524_v16 = vpop.f32.mrf.mxu3 }
 0x5e2   : > { %v1525_v17 = vadd.f32 %v3258_v35, %v1524_v16 }
 0x5e4   : > { %2504 = vtanh.f32 %v1525_v17 }
 0x5ea   : > { %v2505_v20 = vpop.eup %2504 }
 0x5eb   : > { %v1633_v21 = vpop.f32.mrf.mxu0  ;;  %2283 = vmatmul.msk.f32.gmra.mxu0 %vm336_vm0, %v2505_v20 }
 0x5ec   : > { %v1634_v24 = vadd.f32 %v3286_v19, %v1633_v21 }
 0x5ee   : > { %1697 = vrot.lane.b32.xlu1 %v1634_v24, %s2633_s25 }
 0x612   : > { %v1453_v56 = vpop.permute.xlu0 %1452 }
 0x613   : > { %2275 = vmatmul.msk.f32.gmra.mxu3 %vm336_vm0, %v1453_v56 }
 0x619   : > { %v1527_v25 = vpop.f32.mrf.mxu3 }
 0x61a   : > { %v1528_v3 = vadd.f32 %v3258_v35, %v1527_v25 }
 0x61c   : > { %2506 = vtanh.f32 %v1528_v3 }
 0x621   : > { %v1530_v13 = vpop.f32.mrf.mxu3 }
 0x622   : > { %v2507_v29 = vpop.eup %2506  ;;  %v1531_v31 = vadd.f32 %v3258_v35, %v1530_v13 }
 0x623   : > { %v1636_v62 = vpop.f32.mrf.mxu0  ;;  %2284 = vmatmul.msk.f32.gmra.mxu0 %vm336_vm0, %v2507_v29  ;;  %v1766_v29 = vld [vmem:[%s3515_s5 + $0x10] sm:$0xff] }
 0x624   : > { %2508 = vtanh.f32 %v1531_v31  ;;  %v1637_v33 = vadd.f32 %v3286_v19, %v1636_v62 }
 0x626   : > { %1699 = vrot.lane.b32.xlu2 %v1637_v33, %s2633_s25 }
 0x629   : > { %v1533_v34 = vpop.f32.mrf.mxu3 }
 0x62a   : > { %v2509_v2 = vpop.eup %2508  ;;  %v1534_v37 = vadd.f32 %v3258_v35, %v1533_v34 }
 0x62b   : > { %v1639_v39 = vpop.f32.mrf.mxu0  ;;  %2285 = vmatmul.msk.f32.gmra.mxu0 %vm336_vm0, %v2509_v2 }
 0x62c   : > { %2510 = vtanh.f32 %v1534_v37  ;;  %v1640_v40 = vadd.f32 %v3286_v19, %v1639_v39 }
 0x62e   : > { %1701 = vrot.lane.b32.xlu0 %v1640_v40, %s2633_s25 }
 0x631   : > { %v1536_v7 = vpop.f32.mrf.mxu3 }
 0x632   : > { %v2511_v42 = vpop.eup %2510  ;;  %v1537_v43 = vadd.f32 %v3258_v35, %v1536_v7 }
 0x633   : > { %v1642_v45 = vpop.f32.mrf.mxu0  ;;  %2286 = vmatmul.msk.f32.gmra.mxu0 %vm336_vm0, %v2511_v42 }
 0x634   : > { %2512 = vtanh.f32 %v1537_v43  ;;  %v1643_v46 = vadd.f32 %v3286_v19, %v1642_v45 }
 0x636   : > { %1703 = vrot.lane.b32.xlu1 %v1643_v46, %s2633_s25 }
 0x639   : > { %v1539_v48 = vpop.f32.mrf.mxu3 }
 0x63a   : > { %v2513_v49 = vpop.eup %2512  ;;  %v1540_v51 = vadd.f32 %v3258_v35, %v1539_v48 }
 0x63b   : > { %v1645_v52 = vpop.f32.mrf.mxu0  ;;  %2287 = vmatmul.msk.f32.gmra.mxu0 %vm336_vm0, %v2513_v49 }
 0x63c   : > { %2514 = vtanh.f32 %v1540_v51  ;;  %v1646_v18 = vadd.f32 %v3286_v19, %v1645_v52 }
 0x63e   : > { %1705 = vrot.lane.b32.xlu2 %v1646_v18, %s2633_s25 }
 0x641   : > { %v1542_v54 = vpop.f32.mrf.mxu3 }
 0x642   : > { %v2515_v57 = vpop.eup %2514  ;;  %v1543_v58 = vadd.f32 %v3258_v35, %v1542_v54 }
 0x643   : > { %v1648_v23 = vpop.f32.mrf.mxu0  ;;  %2288 = vmatmul.msk.f32.gmra.mxu0 %vm336_vm0, %v2515_v57 }
 0x644   : > { %2516 = vtanh.f32 %v1543_v58  ;;  %v1649_v60 = vadd.f32 %v3286_v19, %v1648_v23 }
 0x646   : > { %1707 = vrot.lane.b32.xlu0 %v1649_v60, %s2633_s25 }
 0x64a   : > { %v2517_v61 = vpop.eup %2516 }
 0x64b   : > { %v1651_v1 = vpop.f32.mrf.mxu0  ;;  %2289 = vmatmul.msk.f32.gmra.mxu0 %vm336_vm0, %v2517_v61 }
 0x64c   : > { %v1652_v27 = vadd.f32 %v3286_v19, %v1651_v1 }
 0x64e   : > { %1709 = vrot.lane.b32.xlu2 %v1652_v27, %s2633_s25 }
 0x65e   : > { %v1545_v4 = vpop.f32.mrf.mxu3 }
 0x65f   : > { %v1546_v5 = vadd.f32 %v3258_v35, %v1545_v4 }
 0x660   : > { %v1698_v8 = vpop.permute.xlu1 %1697 }
 0x661   : > { %2518 = vtanh.f32 %v1546_v5  ;;  %v1745_v30 = vmul.f32 %v2876_v32, %v1698_v8 }
 0x663   : > { %1785 = vrot.lane.b32.xlu1 %v1745_v30, %s2632_s22 }
 0x667   : > { %v2519_v26 = vpop.eup %2518 }
 0x668   : > { %v1654_v9 = vpop.f32.mrf.mxu0  ;;  %2290 = vmatmul.msk.f32.gmra.mxu0 %vm336_vm0, %v2519_v26  ;;  %v3386_v26 = vld [vmem:[#allocation4] ss:$0 sm:$0xff] }
 0x669   : > { %v1655_v10 = vadd.f32 %v3286_v19, %v1654_v9 }
 0x66b   : > { %1711 = vrot.lane.b32.xlu1 %v1655_v10, %s2633_s25 }
 0x680   : > { %v1700_v11 = vpop.permute.xlu2 %1699 }
 0x681   : > { %v1746_v14 = vmul.f32 %v2882_v38, %v1700_v11 }
 0x683   : > { %1787 = vrot.lane.b32.xlu0 %v1746_v14, %s2632_s22  ;;  %v3391_v14 = vld [vmem:[#allocation4 + $0x1] ss:$0 sm:$0xff] }
 0x696   : > { %v1548_v15 = vpop.f32.mrf.mxu3 }
 0x697   : > { %v1549_v16 = vadd.f32 %v3258_v35, %v1548_v15 }
 0x698   : > { %v1706_v38 = vpop.permute.xlu2 %1705 }
 0x699   : > { %2520 = vtanh.f32 %v1549_v16  ;;  %v1749_v25 = vmul.f32 %v2900_v55, %v1706_v38  ;;  %v1764_v55 = vld [vmem:[%s3515_s5] sm:$0xff] }
 0x69f   : > { %v2521_v32 = vpop.eup %2520 }
 0x6a0   : > { %v1657_v17 = vpop.f32.mrf.mxu0  ;;  %2291 = vmatmul.msk.f32.gmra.mxu0 %vm336_vm0, %v2521_v32  ;;  %v1702_v20 = vpop.permute.xlu0 %1701 }
 0x6a1   : > { %v1658_v21 = vadd.f32 %v3286_v19, %v1657_v17  ;;  %v1747_v24 = vmul.f32 %v2888_v44, %v1702_v20  ;;  %v1767_v44 = vld [vmem:[%s3515_s5 + $0x18] sm:$0xff] }
 0x6a2   : > { %1861 = vmatpush.msra.mxu1 %v1767_v44 }
 0x6a3   : > { %1713 = vrot.lane.b32.xlu0 %v1658_v21, %s2633_s25  ;;  %1789 = vrot.lane.b32.xlu2 %v1747_v24, %s2632_s22 }
 0x6a4   : > { %1862 = vmatpush.msra.mxu1 %v1766_v29 }
 0x6a8   : > { %v1704_v56 = vpop.permute.xlu1 %1703  ;;  %v1660_v3 = vpop.f32.mrf.mxu0 }
 0x6a9   : > { %v1748_v35 = vmul.f32 %v2894_v50, %v1704_v56  ;;  %v1661_v13 = vadd.f32 %v3286_v19, %v1660_v3  ;;  %v1765_v50 = vld [vmem:[%s3515_s5 + $0x8] sm:$0xff]  ;;  %v1710_v33 = vpop.permute.xlu2 %1709 }
 0x6aa   : > { %1863 = vmatpush.msra.mxu1 %v1765_v50  ;;  %v1751_v39 = vmul.f32 %v2912_v6, %v1710_v33 }
 0x6ab   : > { %1791 = vrot.lane.b32.xlu1 %v1748_v35, %s2632_s22  ;;  %1793 = vrot.lane.b32.xlu0 %v1749_v25, %s2632_s22 }
 0x6ac   : > { %1715 = vrot.lane.b32.xlu2 %v1661_v13, %s2633_s25  ;;  %1864 = vmatpush.msra.mxu1 %v1764_v55 }
 0x6b0   : > { %v1663_v31 = vpop.f32.mrf.mxu0 }
 0x6b1   : > { %v1664_v62 = vadd.f32 %v3286_v19, %v1663_v31 }
 0x6b3   : > { %1717 = vrot.lane.b32.xlu1 %v1664_v62, %s2633_s25 }
 0x6b8   : > { %v1708_v34 = vpop.permute.xlu0 %1707  ;;  %v1666_v2 = vpop.f32.mrf.mxu0 }
 0x6b9   : > { %v1750_v37 = vmul.f32 %v2906_v63, %v1708_v34  ;;  %v1667_v40 = vadd.f32 %v3286_v19, %v1666_v2 }
 0x6bb   : > { %1795 = vrot.lane.b32.xlu2 %v1750_v37, %s2632_s22  ;;  %1797 = vrot.lane.b32.xlu1 %v1751_v39, %s2632_s22 }
 0x6bc   : > { %1719 = vrot.lane.b32.xlu0 %v1667_v40, %s2633_s25 }
 0x6c0   : > { %v1669_v7 = vpop.f32.mrf.mxu0 }
 0x6c1   : > { %v1670_v42 = vadd.f32 %v3286_v19, %v1669_v7 }
 0x6c3   : > { %1721 = vrot.lane.b32.xlu2 %v1670_v42, %s2633_s25 }
 0x6c8   : > { %v1672_v43 = vpop.f32.mrf.mxu0 }
 0x6c9   : > { %v1673_v45 = vadd.f32 %v3286_v19, %v1672_v43 }
 0x6cb   : > { %1723 = vrot.lane.b32.xlu1 %v1673_v45, %s2633_s25 }
 0x6d5   : > { %v1786_v63 = vpop.permute.xlu1 %1785 }
 0x6d6   : > { %2292 = vmatmul.msk.f32.vlgmr.msra.gmra.mxu1 %vm336_vm0, %v1786_v63 }
 0x6dd   : > { %v1712_v6 = vpop.permute.xlu1 %1711 }
 0x6de   : > { %v1752_v46 = vmul.f32 %v2920_v12, %v1712_v6 }
 0x6e0   : > { %1799 = vrot.lane.b32.xlu0 %v1752_v46, %s2632_s22 }
 0x6e5   : > { %v1675_v48 = vpop.f32.mrf.mxu0 }
 0x6e6   : > { %v1676_v49 = vadd.f32 %v3286_v19, %v1675_v48 }
 0x6e8   : > { %1725 = vrot.lane.b32.xlu0 %v1676_v49, %s2633_s25 }
 0x6f5   : > { %v1788_v51 = vpop.permute.xlu0 %1787 }
 0x6f6   : > { %2293 = vmatmul.msk.f32.gmra.mxu1 %vm336_vm0, %v1788_v51 }
 0x6fd   : > { %v1790_v52 = vpop.permute.xlu2 %1789 }
 0x6fe   : > { %2294 = vmatmul.msk.f32.gmra.mxu1 %vm336_vm0, %v1790_v52 }
 0x706   : > { %v1716_v18 = vpop.permute.xlu2 %1715 }
 0x707   : > { %v1754_v54 = vmul.f32 %v2940_v28, %v1716_v18 }
 0x709   : > { %1803 = vrot.lane.b32.xlu1 %v1754_v54, %s2632_s22 }
 0x715   : > { %v1714_v57 = vpop.permute.xlu0 %1713  ;;  %v1796_v58 = vpop.permute.xlu2 %1795 }
 0x716   : > { %v1753_v12 = vmul.f32 %v2930_v22, %v1714_v57 }
 0x718   : > { %1801 = vrot.lane.b32.xlu2 %v1753_v12, %s2632_s22 }
 0x71d   : > { %v1792_v23 = vpop.permute.xlu1 %1791  ;;  %v1678_v60 = vpop.f32.mrf.mxu0 }
 0x71e   : > { %v1679_v61 = vadd.f32 %v3286_v19, %v1678_v60  ;;  %2295 = vmatmul.msk.f32.gmra.mxu1 %vm336_vm0, %v1792_v23  ;;  %v1722_v1 = vpop.permute.xlu2 %1721  ;;  %v1794_v27 = vpop.permute.xlu0 %1793 }
 0x71f   : > { %v1757_v28 = vmul.f32 %v2967_v47, %v1722_v1  ;;  %v3425_v1 = vld [vmem:[#allocation4 + $0x2] ss:$0 sm:$0xff] }
 0x720   : > { %1727 = vrot.lane.b32.xlu2 %v1679_v61, %s2633_s25 }
 0x725   : > { %v1718_v4 = vpop.permute.xlu1 %1717 }
 0x726   : > { %2296 = vmatmul.msk.f32.gmra.mxu1 %vm336_vm0, %v1794_v27  ;;  %v1755_v22 = vmul.f32 %v2947_v36, %v1718_v4 }
 0x728   : > { %1809 = vrot.lane.b32.xlu2 %v1757_v28, %s2632_s22  ;;  %1805 = vrot.lane.b32.xlu0 %v1755_v22, %s2632_s22 }
 0x72d   : > { %v1798_v8 = vpop.permute.xlu1 %1797 }
 0x72e   : > { %v1720_v5 = vpop.permute.xlu0 %1719  ;;  %2297 = vmatmul.msk.f32.gmra.mxu1 %vm336_vm0, %v1796_v58 }
 0x72f   : > { %v1756_v19 = vmul.f32 %v2957_v41, %v1720_v5 }
 0x731   : > { %1807 = vrot.lane.b32.xlu1 %v1756_v19, %s2632_s22 }
 0x736   : > { %2298 = vmatmul.msk.f32.gmra.mxu1 %vm336_vm0, %v1798_v8 }
 0x73d   : > { %v1724_v47 = vpop.permute.xlu1 %1723 }
 0x73e   : > { %v1758_v30 = vmul.f32 %v2974_v53, %v1724_v47 }
 0x740   : > { %1811 = vrot.lane.b32.xlu0 %v1758_v30, %s2632_s22 }
 0x752   : > { %v1800_v36 = vpop.permute.xlu0 %1799 }
 0x753   : > { %2299 = vmatmul.msk.f32.gmra.mxu1 %vm336_vm0, %v1800_v36  ;;  %v1866_v9 = vpop.f32.mrf.mxu1 }
 0x754   : > { %v1867_v10 = vadd.f32 %v3386_v26, %v1866_v9 }
 0x756   : > { %2522 = vtanh.f32 %v1867_v10 }
 0x75a   : > { %v1726_v11 = vpop.permute.xlu0 %1725 }
 0x75b   : > { %v1759_v41 = vmul.f32 %v2981_v59, %v1726_v11 }
 0x75c   : > { %v2523_v15 = vpop.eup %2522 }
 0x75d   : > { %1813 = vrot.lane.b32.xlu1 %v1759_v41, %s2632_s22  ;;  %v1931_v53 = vmul.f32 %v2523_v15, %v3391_v14 }
 0x75f   : > { %v1947_v16 = vsel %vm336_vm0, %v1931_v53, 0.0 }
 0x76a   : > { %1948 = vadd.xlane.f32.xlu0 %v1947_v16 }
 0x772   : > { %v1802_v32 = vpop.permute.xlu2 %1801 }
 0x773   : > { %v1869_v17 = vpop.f32.mrf.mxu1  ;;  %2300 = vmatmul.msk.f32.gmra.mxu1 %vm336_vm0, %v1802_v32 }
 0x774   : > { %v1870_v20 = vadd.f32 %v3386_v26, %v1869_v17 }
 0x776   : > { %2524 = vtanh.f32 %v1870_v20 }
 0x77a   : > { %v1728_v21 = vpop.permute.xlu2 %1727 }
 0x77b   : > { %v1804_v59 = vpop.permute.xlu1 %1803  ;;  %v1760_v24 = vmul.f32 %v2986_v0, %v1728_v21  ;;  %v1872_v35 = vpop.f32.mrf.mxu1 }
 0x77c   : > { %2301 = vmatmul.msk.f32.gmra.mxu1 %vm336_vm0, %v1804_v59  ;;  %v2525_v38 = vpop.eup %2524  ;;  %v1873_v3 = vadd.f32 %v3386_v26, %v1872_v35 }
 0x77d   : > { %1815 = vrot.lane.b32.xlu2 %v1760_v24, %s2632_s22  ;;  %v1932_v56 = vmul.f32 %v2525_v38, %v3391_v14 }
 0x77e   : > { %2526 = vtanh.f32 %v1873_v3 }
 0x77f   : > { %v1950_v25 = vsel %vm336_vm0, %v1932_v56, 0.0 }
 0x782   : > { %v1810_v37 = vpop.permute.xlu2 %1809 }
 0x784   : > { %v2527_v0 = vpop.eup %2526 }
 0x785   : > { %v1933_v50 = vmul.f32 %v2527_v0, %v3391_v14 }
 0x787   : > { %1951 = vadd.xlane.f32.xlu1 %v1950_v25  ;;  %v1953_v33 = vsel %vm336_vm0, %v1933_v50, 0.0 }
 0x79a   : > { %v1806_v13 = vpop.permute.xlu0 %1805 }
 0x79b   : > { %v1875_v44 = vpop.f32.mrf.mxu1  ;;  %2302 = vmatmul.msk.f32.gmra.mxu1 %vm336_vm0, %v1806_v13 }
 0x79c   : > { %v1876_v29 = vadd.f32 %v3386_v26, %v1875_v44 }
 0x79e   : > { %2528 = vtanh.f32 %v1876_v29 }
 0x7a3   : > { %v1808_v55 = vpop.permute.xlu1 %1807  ;;  %v1878_v31 = vpop.f32.mrf.mxu1 }
 0x7a4   : > { %v1879_v62 = vadd.f32 %v3386_v26, %v1878_v31  ;;  %2303 = vmatmul.msk.f32.gmra.mxu1 %vm336_vm0, %v1808_v55  ;;  %v2529_v34 = vpop.eup %2528 }
 0x7a5   : > { %v1934_v2 = vmul.f32 %v2529_v34, %v3391_v14 }
 0x7a6   : > { %2530 = vtanh.f32 %v1879_v62  ;;  %1954 = vadd.xlane.f32.xlu2 %v1953_v33 }
 0x7a7   : > { %v1956_v42 = vsel %vm336_vm0, %v1934_v2, 0.0 }
 0x7ab   : > { %v1881_v39 = vpop.f32.mrf.mxu1 }
 0x7ac   : > { %v2531_v40 = vpop.eup %2530  ;;  %v1882_v7 = vadd.f32 %v3386_v26, %v1881_v39  ;;  %2304 = vmatmul.msk.f32.gmra.mxu1 %vm336_vm0, %v1810_v37 }
 0x7ad   : > { %v1935_v43 = vmul.f32 %v2531_v40, %v3391_v14 }
 0x7ae   : > { %2532 = vtanh.f32 %v1882_v7  ;;  %1957 = vadd.xlane.f32.xlu2 %v1956_v42 }
 0x7af   : > { %v1959_v45 = vsel %vm336_vm0, %v1935_v43, 0.0 }
 0x7b0   : > { %1960 = vadd.xlane.f32.xlu0 %v1959_v45 }
 0x7b2   : > { %v1812_v63 = vpop.permute.xlu0 %1811 }
 0x7b3   : > { %v1884_v6 = vpop.f32.mrf.mxu1 }
 0x7b4   : > { %v2533_v46 = vpop.eup %2532  ;;  %v1885_v48 = vadd.f32 %v3386_v26, %v1884_v6  ;;  %2305 = vmatmul.msk.f32.gmra.mxu1 %vm336_vm0, %v1812_v63 }
 0x7b5   : > { %v1936_v49 = vmul.f32 %v2533_v46, %v3391_v14 }
 0x7b6   : > { %2534 = vtanh.f32 %v1885_v48 }
 0x7b7   : > { %v1962_v51 = vsel %vm336_vm0, %v1936_v49, 0.0 }
 0x7b8   : > { %1963 = vadd.xlane.f32.xlu1 %v1962_v51 }
 0x7bc   : > { %v2535_v52 = vpop.eup %2534 }
 0x7bd   : > { %v1937_v18 = vmul.f32 %v2535_v52, %v3391_v14 }
 0x7bf   : > { %v1965_v54 = vsel %vm336_vm0, %v1937_v18, 0.0 }
 0x7c0   : > { %1966 = vadd.xlane.f32.xlu2 %v1965_v54 }
 0x7cf   : > { %v1814_v57 = vpop.permute.xlu1 %1813 }
 0x7d0   : > { %v1887_v12 = vpop.f32.mrf.mxu1  ;;  %2306 = vmatmul.msk.f32.gmra.mxu1 %vm336_vm0, %v1814_v57 }
 0x7d1   : > { %v1888_v58 = vadd.f32 %v3386_v26, %v1887_v12 }
 0x7d3   : > { %2536 = vtanh.f32 %v1888_v58 }
 0x7d7   : > { %v1816_v23 = vpop.permute.xlu2 %1815 }
 0x7d8   : > { %2307 = vmatmul.msk.f32.gmra.mxu1 %vm336_vm0, %v1816_v23 }
 0x7d9   : > { %v2537_v60 = vpop.eup %2536 }
 0x7da   : > { %v1938_v61 = vmul.f32 %v2537_v60, %v3391_v14 }
 0x7dc   : > { %v1968_v27 = vsel %vm336_vm0, %v1938_v61, 0.0 }
 0x7dd   : > { %1969 = vadd.xlane.f32.xlu0 %v1968_v27  ;;  %v1949_v28 = vpop.xlane.xlu0 %1948 }
 0x7de   : > { %v1996_v4 = vadd.f32 %v3425_v1, %v1949_v28 }
 0x7e0   : > { %2013 = vst.msk [vmem:[%s3433_s30] sm:$0xff] %vm2012_vm1, %v1996_v4 }
 0x7f0   : > { %v1890_v22 = vpop.f32.mrf.mxu1 }
 0x7f1   : > { %v1891_v5 = vadd.f32 %v3386_v26, %v1890_v22 }
 0x7f3   : > { %2538 = vtanh.f32 %v1891_v5 }
 0x7f9   : > { %v2539_v19 = vpop.eup %2538  ;;  %v1893_v8 = vpop.f32.mrf.mxu1 }
 0x7fa   : > { %v1894_v47 = vadd.f32 %v3386_v26, %v1893_v8  ;;  %v1952_v30 = vpop.xlane.xlu1 %1951  ;;  %v1939_v36 = vmul.f32 %v2539_v19, %v3391_v14 }
 0x7fb   : > { %v1997_v9 = vadd.f32 %v3425_v1, %v1952_v30 }
 0x7fc   : > { %2540 = vtanh.f32 %v1894_v47  ;;  %v1971_v10 = vsel %vm336_vm0, %v1939_v36, 0.0 }
 0x7fd   : > { %2014 = vst.msk [vmem:[%s3433_s30 + $0x8] sm:$0xff] %vm2012_vm1, %v1997_v9  ;;  %1972 = vadd.xlane.f32.xlu1 %v1971_v10 }
 0x802   : > { %v2541_v11 = vpop.eup %2540 }
 0x803   : > { %v1940_v41 = vmul.f32 %v2541_v11, %v3391_v14 }
 0x805   : > { %v1974_v15 = vsel %vm336_vm0, %v1940_v41, 0.0 }
 0x806   : > { %1975 = vadd.xlane.f32.xlu2 %v1974_v15 }
 0x818   : > { %v1896_v53 = vpop.f32.mrf.mxu1 }
 0x819   : > { %v1955_v16 = vpop.xlane.xlu2 %1954  ;;  %v1897_v32 = vadd.f32 %v3386_v26, %v1896_v53 }
 0x81a   : > { %v1998_v17 = vadd.f32 %v3425_v1, %v1955_v16 }
 0x81b   : > { %2542 = vtanh.f32 %v1897_v32 }
 0x81c   : > { %2015 = vst.msk [vmem:[%s3433_s30 + $0x10] sm:$0xff] %vm2012_vm1, %v1998_v17 }
 0x821   : > { %v1899_v20 = vpop.f32.mrf.mxu1  ;;  %v1958_v21 = vpop.xlane.xlu2 %1957 }
 0x822   : > { %v2543_v59 = vpop.eup %2542  ;;  %v1900_v24 = vadd.f32 %v3386_v26, %v1899_v20  ;;  %v1999_v38 = vadd.f32 %v3425_v1, %v1958_v21 }
 0x823   : > { %v1961_v56 = vpop.xlane.xlu0 %1960  ;;  %v1941_v25 = vmul.f32 %v2543_v59, %v3391_v14 }
 0x824   : > { %2544 = vtanh.f32 %v1900_v24  ;;  %2016 = vst.msk [vmem:[%s3433_s30 + $0x18] sm:$0xff] %vm2012_vm1, %v1999_v38  ;;  %v2000_v35 = vadd.f32 %v3425_v1, %v1961_v56 }
 0x825   : > { %v1977_v3 = vsel %vm336_vm0, %v1941_v25, 0.0 }
 0x826   : > { %2017 = vst.msk [vmem:[%s3433_s30 + $0x20] sm:$0xff] %vm2012_vm1, %v2000_v35  ;;  %1978 = vadd.xlane.f32.xlu0 %v1977_v3 }
 0x829   : > { %v1902_v13 = vpop.f32.mrf.mxu1 }
 0x82a   : > { %v2545_v44 = vpop.eup %2544  ;;  %v1903_v29 = vadd.f32 %v3386_v26, %v1902_v13 }
 0x82b   : > { %v1964_v0 = vpop.xlane.xlu1 %1963  ;;  %v1942_v50 = vmul.f32 %v2545_v44, %v3391_v14 }
 0x82c   : > { %2546 = vtanh.f32 %v1903_v29  ;;  %v2001_v55 = vadd.f32 %v3425_v1, %v1964_v0 }
 0x82d   : > { %v1980_v31 = vsel %vm336_vm0, %v1942_v50, 0.0 }
 0x82e   : > { %2018 = vst.msk [vmem:[%s3433_s30 + $0x28] sm:$0xff] %vm2012_vm1, %v2001_v55  ;;  %1981 = vadd.xlane.f32.xlu1 %v1980_v31 }
 0x831   : > { %v1905_v62 = vpop.f32.mrf.mxu1 }
 0x832   : > { %v2547_v33 = vpop.eup %2546  ;;  %v1906_v34 = vadd.f32 %v3386_v26, %v1905_v62 }
 0x833   : > { %v1967_v2 = vpop.xlane.xlu2 %1966  ;;  %v1943_v37 = vmul.f32 %v2547_v33, %v3391_v14 }
 0x834   : > { %2548 = vtanh.f32 %v1906_v34  ;;  %v2002_v39 = vadd.f32 %v3425_v1, %v1967_v2 }
 0x835   : > { %v1983_v40 = vsel %vm336_vm0, %v1943_v37, 0.0 }
 0x836   : > { %2019 = vst.msk [vmem:[%s3433_s30 + $0x30] sm:$0xff] %vm2012_vm1, %v2002_v39  ;;  %1984 = vadd.xlane.f32.xlu2 %v1983_v40 }
 0x83a   : > { %v2549_v7 = vpop.eup %2548 }
 0x83b   : > { %v1944_v42 = vmul.f32 %v2549_v7, %v3391_v14 }
 0x83d   : > { %v1986_v43 = vsel %vm336_vm0, %v1944_v42, 0.0 }
 0x83e   : > { %1987 = vadd.xlane.f32.xlu0 %v1986_v43 }
 0x84d   : > { %v1908_v45 = vpop.f32.mrf.mxu1 }
 0x84e   : > { %v1909_v63 = vadd.f32 %v3386_v26, %v1908_v45 }
 0x850   : > { %2550 = vtanh.f32 %v1909_v63  ;;  %v1970_v6 = vpop.xlane.xlu0 %1969 }
 0x851   : > { %v2003_v46 = vadd.f32 %v3425_v1, %v1970_v6 }
 0x853   : > { %2020 = vst.msk [vmem:[%s3433_s30 + $0x38] sm:$0xff] %vm2012_vm1, %v2003_v46 }
 0x855   : > { %v1911_v48 = vpop.f32.mrf.mxu1 }
 0x856   : > { %v2551_v49 = vpop.eup %2550  ;;  %v1912_v51 = vadd.f32 %v3386_v26, %v1911_v48 }
 0x857   : > { %v1945_v52 = vmul.f32 %v2551_v49, %v3391_v14 }
 0x858   : > { %2552 = vtanh.f32 %v1912_v51 }
 0x859   : > { %v1989_v18 = vsel %vm336_vm0, %v1945_v52, 0.0 }
 0x85a   : > { %1990 = vadd.xlane.f32.xlu1 %v1989_v18 }
 0x85e   : > { %v2553_v54 = vpop.eup %2552 }
 0x85f   : > { %v1946_v57 = vmul.f32 %v2553_v54, %v3391_v14 }
 0x861   : > { %v1992_v12 = vsel %vm336_vm0, %v1946_v57, 0.0 }
 0x862   : > { %1993 = vadd.xlane.f32.xlu2 %v1992_v12 }
 0x870   : > { %v1973_v58 = vpop.xlane.xlu1 %1972 }
 0x871   : > { %v2004_v23 = vadd.f32 %v3425_v1, %v1973_v58 }
 0x873   : > { %2021 = vst.msk [vmem:[%s3433_s30 + $0x40] sm:$0xff] %vm2012_vm1, %v2004_v23 }
 0x879   : > { %v1976_v26 = vpop.xlane.xlu2 %1975 }
 0x87a   : > { %v2005_v60 = vadd.f32 %v3425_v1, %v1976_v26 }
 0x87c   : > { %2022 = vst.msk [vmem:[%s3433_s30 + $0x48] sm:$0xff] %vm2012_vm1, %v2005_v60 }
 0x899   : > { %v1979_v61 = vpop.xlane.xlu0 %1978 }
 0x89a   : > { %v2006_v27 = vadd.f32 %v3425_v1, %v1979_v61 }
 0x89c   : > { %2023 = vst.msk [vmem:[%s3433_s30 + $0x50] sm:$0xff] %vm2012_vm1, %v2006_v27 }
 0x8a1   : > { %v1982_v14 = vpop.xlane.xlu1 %1981 }
 0x8a2   : > { %v2007_v28 = vadd.f32 %v3425_v1, %v1982_v14 }
 0x8a4   : > { %2024 = vst.msk [vmem:[%s3433_s30 + $0x58] sm:$0xff] %vm2012_vm1, %v2007_v28 }
 0x8a9   : > { %v1985_v4 = vpop.xlane.xlu2 %1984 }
 0x8aa   : > { %v2008_v22 = vadd.f32 %v3425_v1, %v1985_v4 }
 0x8ac   : > { %2025 = vst.msk [vmem:[%s3433_s30 + $0x60] sm:$0xff] %vm2012_vm1, %v2008_v22 }
 0x8b1   : > { %v1988_v5 = vpop.xlane.xlu0 %1987 }
 0x8b2   : > { %v2009_v19 = vadd.f32 %v3425_v1, %v1988_v5 }
 0x8b4   : > { %2026 = vst.msk [vmem:[%s3433_s30 + $0x68] sm:$0xff] %vm2012_vm1, %v2009_v19 }
 0x8cd   : > { %v1991_v8 = vpop.xlane.xlu1 %1990 }
 0x8ce   : > { %v2010_v47 = vadd.f32 %v3425_v1, %v1991_v8 }
 0x8d0   : > { %2027 = vst.msk [vmem:[%s3433_s30 + $0x70] sm:$0xff] %vm2012_vm1, %v2010_v47 }
 0x8d5   : > { %v1994_v30 = vpop.xlane.xlu2 %1993 }
 0x8d6   : > { %v2011_v36 = vadd.f32 %v3425_v1, %v1994_v30 }
 0x8d8   : > { %2028 = vst.msk [vmem:[%s3433_s30 + $0x78] sm:$0xff] %vm2012_vm1, %v2011_v36 }
 0x8d9 PF: > { %s19_s24 = sadd.s32 1, %s2628_s24  }
 0x8da   : > { %p16_p7 = scmp.ge.s32.totalorder %s19_s24, 4  }
 0x8dc   :  { %18 = sbr.rel (!%p16_p7) target bundleno = 2 (0x2), region = 94 }
 0x8e1   :  { %2051 = vsyncpa [#allocation3], 1 }
 0x8e2   :  { %2053 = vsyncpa [#allocation3 + $0x1], 1 }
 0x8e3   :  { %2054 = vsyncpa [#allocation5], 1 }

</bundles_post_ra>
